<compile_context>
chip_gen: v6e
topology: v6e:2x2x1
jax: 0.10.0
libtpu: 0.0.40
codegen_flags: <defaults>
</compile_context>

<pallas_src>
import functools

import jax
import jax.numpy as jnp
from jax.experimental import pallas as pl
from jax.experimental.pallas import tpu as pltpu

LANE = 128


def _round_up(c, m=LANE):
    return ((c + m - 1) // m) * m


def _pick_batch_tile(n, seq_len, rows_target=256):
    """Batch-tile so each grid step feeds >= rows_target rows to the MXU, while
    keeping >= 2 grid steps when n > 1 (megacore / v7x dual-TC)."""
    bt = max(1, rows_target // max(seq_len, 1))
    bt = min(bt, max(1, -(-n // 2)))
    return max(1, min(bt, n))


# ---------------------------------------------------------------------------
# Fused whole-network kernel (one batch tile per grid step)
# ---------------------------------------------------------------------------
def _fused_tcn_kernel(x_ref, w_ref, b_ref, o_ref, pad_ref, *,
                      layer_meta, batch_tile, seq_len, c_in, c0_p, out_last,
                      kernel_size, matmul_dtype):
    """x_ref: (Nb, L, c_in) f32, w_ref: (rows, max_out_p) bf16 weight slab,
    b_ref: (n_bias, max_out_p) f32 bias slab, o_ref: (Nb, L, out_last) f32,
    pad_ref: (Nb*L, c0_p) f32 VMEM scratch used to lane-pad the input."""
    rows = batch_tile * seq_len

    # Lane-pad the unpadded HBM input to 128 lanes *inside VMEM* and flatten
    # batch*time into the matmul M dimension (no reshapes on narrow-lane data).
    pad_ref[...] = jnp.zeros_like(pad_ref)
    for b in range(batch_tile):
        pad_ref[b * seq_len:(b + 1) * seq_len, :c_in] = x_ref[b]
    h = pad_ref[...]                                    # (Nb*L, c0_p) f32

    # Per-element time index (t mod L), hoisted once: a single mask handles
    # both causal zeroing and cross-batch leakage of the flat circular roll.
    t_idx = jax.lax.broadcasted_iota(jnp.int32, (rows, 1), 0) % seq_len

    biases = b_ref[...]                                 # (n_bias, max_out_p) f32

    def tap(v, shift):
        # y[b, t] = v[b, t - shift] (zeros for t < shift), on the flat rows.
        if shift >= seq_len:
            return jnp.zeros(v.shape, matmul_dtype)
        if shift == 0:
            return v.astype(matmul_dtype)
        rolled = pltpu.roll(v, shift=shift, axis=0)     # XLU sublane rotate (f32)
        return jnp.where(t_idx >= shift, rolled, 0.0).astype(matmul_dtype)

    def causal_conv(v, d, w_off, w_rows, b_row, out_p):
        # All k taps fused into one deep-contraction MXU matmul.
        taps = [tap(v, (kernel_size - 1 - j) * d) for j in range(kernel_size)]
        vcat = jnp.concatenate(taps, axis=-1)           # (rows, k*Cp) bf16
        w = w_ref[w_off:w_off + w_rows, :out_p]         # 128-aligned static slice
        out = jnp.dot(vcat, w, preferred_element_type=jnp.float32)
        return out + biases[b_row:b_row + 1, :out_p]

    for m in layer_meta:
        d, in_p, out_p = m["dilation"], m["in_p"], m["out_p"]
        # conv1 -> chomp -> relu ; conv2 -> chomp -> relu (dropout = identity)
        a = jnp.maximum(
            causal_conv(h, d, m["w1_off"], kernel_size * in_p, m["b1_row"], out_p),
            0.0)
        a2 = jnp.maximum(
            causal_conv(a, d, m["w2_off"], kernel_size * out_p, m["b2_row"], out_p),
            0.0)
        if m["has_ds"]:
            wd = w_ref[m["wd_off"]:m["wd_off"] + in_p, :out_p]
            res = jnp.dot(h.astype(matmul_dtype), wd,
                          preferred_element_type=jnp.float32)
            res = res + biases[m["bd_row"]:m["bd_row"] + 1, :out_p]
        else:
            res = h
        h = jnp.maximum(a2 + res, 0.0)

    # Store only the real output channels (no 128-lane padded HBM writeback).
    for b in range(batch_tile):
        o_ref[b] = h[b * seq_len:(b + 1) * seq_len, :out_last].astype(o_ref.dtype)


# ---------------------------------------------------------------------------
# Parameter construction (deterministic, synthetic effective weights)
# ---------------------------------------------------------------------------
def init_tcn_params(key, num_inputs, num_channels, kernel_size=2):
    """Raw (unpadded) channels-last weights: conv taps (k, Cin, Cout), bias (Cout,)."""
    params = []
    for i, out_ch in enumerate(num_channels):
        in_ch = num_inputs if i == 0 else num_channels[i - 1]
        key, k1, k2, k3, k4, k5, k6 = jax.random.split(key, 7)
        w1 = 0.01 * jax.random.normal(k1, (kernel_size, in_ch, out_ch), jnp.float32)
        w2 = 0.01 * jax.random.normal(k2, (kernel_size, out_ch, out_ch), jnp.float32)
        bnd1 = 1.0 / (in_ch * kernel_size) ** 0.5
        bnd2 = 1.0 / (out_ch * kernel_size) ** 0.5
        b1 = jax.random.uniform(k3, (out_ch,), jnp.float32, -bnd1, bnd1)
        b2 = jax.random.uniform(k4, (out_ch,), jnp.float32, -bnd2, bnd2)
        has_ds = in_ch != out_ch
        if has_ds:
            wd = 0.01 * jax.random.normal(k5, (in_ch, out_ch), jnp.float32)
            bndd = 1.0 / in_ch ** 0.5
            bd = jax.random.uniform(k6, (out_ch,), jnp.float32, -bndd, bndd)
        else:
            wd, bd = None, None
        params.append(dict(w1=w1, b1=b1, w2=w2, b2=b2, wd=wd, bd=bd,
                           in_ch=in_ch, out_ch=out_ch,
                           dilation=2 ** i, has_downsample=has_ds))
    return params


def _pad_cat_taps(w, in_p, out_p, dtype):
    """(k, in_ch, out_ch) -> (k*in_p, out_p): taps stacked along rows, zero padded."""
    k, in_ch, out_ch = w.shape
    out = jnp.zeros((k, in_p, out_p), dtype).at[:, :in_ch, :out_ch].set(w.astype(dtype))
    return out.reshape(k * in_p, out_p)


def prepare_fused_operands(params, matmul_dtype=jnp.bfloat16):
    """Consolidate ALL weights into one bf16 row-slab and ALL biases into one
    f32 slab (both 128-lane dense, row offsets 128-aligned) + static metadata."""
    max_out_p = max(_round_up(p["out_ch"]) for p in params)
    w_blocks, b_rows, meta = [], [], []
    row = [0]

    def add_w(block2d):
        r, c = block2d.shape
        padded = jnp.zeros((r, max_out_p), matmul_dtype).at[:, :c].set(block2d)
        w_blocks.append(padded)
        off = row[0]
        row[0] += r
        return off

    def add_b(bvec, out_ch):
        b_rows.append(jnp.zeros((max_out_p,), jnp.float32).at[:out_ch].set(bvec))
        return len(b_rows) - 1

    for p in params:
        in_p, out_p = _round_up(p["in_ch"]), _round_up(p["out_ch"])
        m = dict(dilation=p["dilation"], has_ds=p["has_downsample"],
                 in_p=in_p, out_p=out_p,
                 w1_off=add_w(_pad_cat_taps(p["w1"], in_p, out_p, matmul_dtype)),
                 b1_row=add_b(p["b1"], p["out_ch"]),
                 w2_off=add_w(_pad_cat_taps(p["w2"], out_p, out_p, matmul_dtype)),
                 b2_row=add_b(p["b2"], p["out_ch"]))
        if p["has_downsample"]:
            wd = jnp.zeros((in_p, out_p), matmul_dtype)
            wd = wd.at[:p["in_ch"], :p["out_ch"]].set(p["wd"].astype(matmul_dtype))
            m["wd_off"] = add_w(wd)
            m["bd_row"] = add_b(p["bd"], p["out_ch"])
        meta.append(m)

    w_slab = jnp.concatenate(w_blocks, axis=0)      # (total_rows, max_out_p) bf16
    b_slab = jnp.stack(b_rows, axis=0)              # (n_bias, max_out_p) f32
    return w_slab, b_slab, meta


# ---------------------------------------------------------------------------
# Full TemporalConvNet forward (single Pallas call) and a pure-JAX reference
# ---------------------------------------------------------------------------
def tcn_forward_pallas(x_ncl, params, matmul_dtype=jnp.bfloat16, batch_tile=None):
    """x_ncl: (N, C_in, L) as in PyTorch. Returns (N, C_out, L) float32."""
    n, c_in, seq_len = x_ncl.shape
    kernel_size = params[0]["w1"].shape[0]
    c0_p = _round_up(c_in)
    out_last = params[-1]["out_ch"]

    w_slab, b_slab, meta = prepare_fused_operands(params, matmul_dtype)

    if batch_tile is None:
        batch_tile = _pick_batch_tile(n, seq_len)
    n_steps = -(-n // batch_tile)
    n_pad = n_steps * batch_tile

    # NCL -> NLC; channels stay UNPADDED in HBM (lane padding happens in VMEM).
    x_nlc = jnp.transpose(x_ncl, (0, 2, 1))
    if n_pad != n:
        x_nlc = jnp.pad(x_nlc, ((0, n_pad - n), (0, 0), (0, 0)))

    kernel = functools.partial(
        _fused_tcn_kernel, layer_meta=meta, batch_tile=batch_tile,
        seq_len=seq_len, c_in=c_in, c0_p=c0_p, out_last=out_last,
        kernel_size=kernel_size, matmul_dtype=matmul_dtype)

    def build(single_buffer_weights):
        # Weights/biases never change across grid steps -> single-buffer them.
        const_kwargs = (dict(pipeline_mode=pl.Buffered(1))
                        if single_buffer_weights else {})
        in_specs = [
            pl.BlockSpec((batch_tile, seq_len, c_in), lambda i: (i, 0, 0)),
            pl.BlockSpec(w_slab.shape, lambda i: (0, 0), **const_kwargs),
            pl.BlockSpec(b_slab.shape, lambda i: (0, 0), **const_kwargs),
        ]
        out_spec = pl.BlockSpec((batch_tile, seq_len, out_last), lambda i: (i, 0, 0))
        return pl.pallas_call(
            kernel,
            out_shape=jax.ShapeDtypeStruct((n_pad, seq_len, out_last), jnp.float32),
            grid=(n_steps,),
            in_specs=in_specs,
            out_specs=out_spec,
            scratch_shapes=[pltpu.VMEM((batch_tile * seq_len, c0_p), jnp.float32)],
            compiler_params=pltpu.CompilerParams(
                dimension_semantics=("parallel",),
                vmem_limit_bytes=32 * 1024 * 1024),
        )

    out_nlc = None
    for single_buf in (True, False):
        try:
            out_nlc = build(single_buf)(x_nlc, w_slab, b_slab)
            out_nlc = jax.block_until_ready(out_nlc)
            break
        except Exception:
            # Fallback for jax/jaxlib versions without pipeline_mode support.
            if not single_buf:
                raise

    # Drop batch padding; NLC -> NCL.
    return jnp.transpose(out_nlc[:n], (0, 2, 1))


def _ref_causal_conv(h_nlc, w, b, d, matmul_dtype):
    k = w.shape[0]
    seq_len = h_nlc.shape[1]
    out = jnp.zeros(h_nlc.shape[:2] + (w.shape[2],), jnp.float32)
    for j in range(k):
        shift = (k - 1 - j) * d
        hs = jnp.pad(h_nlc, ((0, 0), (shift, 0), (0, 0)))[:, :seq_len, :]
        out = out + jnp.einsum("nlc,cd->nld",
                               hs.astype(matmul_dtype),
                               w[j].astype(matmul_dtype),
                               preferred_element_type=jnp.float32)
    return out + b[None, None, :]


def tcn_forward_ref(x_ncl, params, matmul_dtype=jnp.float32):
    h = jnp.transpose(x_ncl, (0, 2, 1)).astype(jnp.float32)
    for p in params:
        d = p["dilation"]
        a = jax.nn.relu(_ref_causal_conv(h, p["w1"], p["b1"], d, matmul_dtype))
        a = jax.nn.relu(_ref_causal_conv(a, p["w2"], p["b2"], d, matmul_dtype))
        if p["has_downsample"]:
            res = jnp.einsum("nlc,cd->nld",
                             h.astype(matmul_dtype),
                             p["wd"].astype(matmul_dtype),
                             preferred_element_type=jnp.float32)
            res = res + p["bd"][None, None, :]
        else:
            res = h
        h = jax.nn.relu(a + res)
    return jnp.transpose(h, (0, 2, 1))


# ---------------------------------------------------------------------------
if __name__ == "__main__":
    key = jax.random.PRNGKey(0)
    k_x, k_p = jax.random.split(key)

    # Small shapes consistent with the module: x is (batch, num_inputs, seq_len).
    batch, num_inputs, seq_len = 4, 4, 16
    num_channels = (8, 8, 16)
    kernel_size = 2

    x = jax.random.normal(k_x, (batch, num_inputs, seq_len), jnp.float32)
    params = init_tcn_params(k_p, num_inputs, num_channels, kernel_size)

    out = jax.block_until_ready(tcn_forward_pallas(x, params))
    assert out.shape == (batch, num_channels[-1], seq_len), out.shape

    # Check 1: matched-numerics reference (bf16 matmul operands, f32 accumulate).
    ref_bf16 = jax.block_until_ready(
        tcn_forward_ref(x, params, matmul_dtype=jnp.bfloat16))
    assert jnp.allclose(out, ref_bf16, atol=1e-4, rtol=1e-4), \
        float(jnp.max(jnp.abs(out - ref_bf16)))

    # Check 2: loose sanity check against exact float32 module semantics.
    ref_f32 = jax.block_until_ready(tcn_forward_ref(x, params))
    assert jnp.allclose(out, ref_f32, atol=5e-2, rtol=5e-2), \
        float(jnp.max(jnp.abs(out - ref_f32)))

    print("KERNEL_OK")
</pallas_src>

<mosaic_0001>
module attributes {stable_mosaic.version = 11 : i64} {
  func.func @_fused_tcn_kernel(%arg0: i32, %arg1: memref<2x16x4xf32, #tpu.memory_space<vmem>>, %arg2: memref<1792x128xbf16, #tpu.memory_space<vmem>>, %arg3: memref<8x128xf32, #tpu.memory_space<vmem>>, %arg4: memref<2x16x16xf32, #tpu.memory_space<vmem>>, %arg5: memref<32x128xf32, #tpu.memory_space<vmem>>) attributes {dimension_semantics = [#tpu.dimension_semantics<parallel>], iteration_bounds = array<i64: 2>, scalar_prefetch = 0 : i64, scratch_operands = 1 : i64, tpu.core_type = #tpu.core_type<tc>, window_params = [{transform_indices = @transform_0, window_bounds = array<i64: 2, 16, 4>}, {pipeline_mode = #tpu.pipeline_mode<synchronous>, transform_indices = @transform_1, window_bounds = array<i64: 1792, 128>}, {pipeline_mode = #tpu.pipeline_mode<synchronous>, transform_indices = @transform_2, window_bounds = array<i64: 8, 128>}, {transform_indices = @transform_3, window_bounds = array<i64: 2, 16, 16>}]} {
    %cst = arith.constant 0.000000e+00 : f32
    %0 = vector.broadcast %cst : f32 to vector<32x128xf32>
    %c0 = arith.constant 0 : index
    %c0_0 = arith.constant 0 : index
    %1 = vector.load %arg5[%c0, %c0_0] : memref<32x128xf32, #tpu.memory_space<vmem>>, vector<32x128xf32>
    tpu.vector_store %arg5[%c0, %c0_0], %0 {strides = array<i32>} : memref<32x128xf32, #tpu.memory_space<vmem>>, vector<32x128xf32>,
    %c0_1 = arith.constant 0 : index
    %c0_2 = arith.constant 0 : index
    %c0_3 = arith.constant 0 : index
    %2 = vector.load %arg1[%c0_1, %c0_2, %c0_3] : memref<2x16x4xf32, #tpu.memory_space<vmem>>, vector<1x16x4xf32>
    %3 = vector.shape_cast %2 : vector<1x16x4xf32> to vector<16x4xf32>
    %c0_4 = arith.constant 0 : index
    %c0_5 = arith.constant 0 : index
    %4 = vector.load %arg5[%c0_4, %c0_5] : memref<32x128xf32, #tpu.memory_space<vmem>>, vector<16x4xf32>
    tpu.vector_store %arg5[%c0_4, %c0_5], %3 {strides = array<i32>} : memref<32x128xf32, #tpu.memory_space<vmem>>, vector<16x4xf32>,
    %c1 = arith.constant 1 : index
    %c0_6 = arith.constant 0 : index
    %c0_7 = arith.constant 0 : index
    %5 = vector.load %arg1[%c1, %c0_6, %c0_7] : memref<2x16x4xf32, #tpu.memory_space<vmem>>, vector<1x16x4xf32>
    %6 = vector.shape_cast %5 : vector<1x16x4xf32> to vector<16x4xf32>
    %c16 = arith.constant 16 : index
    %c0_8 = arith.constant 0 : index
    %7 = vector.load %arg5[%c16, %c0_8] : memref<32x128xf32, #tpu.memory_space<vmem>>, vector<16x4xf32>
    tpu.vector_store %arg5[%c16, %c0_8], %6 {strides = array<i32>} : memref<32x128xf32, #tpu.memory_space<vmem>>, vector<16x4xf32>,
    %c0_9 = arith.constant 0 : index
    %c0_10 = arith.constant 0 : index
    %8 = vector.load %arg5[%c0_9, %c0_10] : memref<32x128xf32, #tpu.memory_space<vmem>>, vector<32x128xf32>
    %9 = tpu.iota {dimensions = array<i32: 0>} : vector<32x1xi32>
    %c16_i32 = arith.constant 16 : i32
    %c0_i32 = arith.constant 0 : i32
    %10 = arith.cmpi eq, %c16_i32, %c0_i32 : i32
    %c1_i32 = arith.constant 1 : i32
    %11 = arith.select %10, %c1_i32, %c16_i32 : i32
    %12 = vector.broadcast %11 : i32 to vector<32x1xi32>
    %13 = arith.remsi %9, %12 : vector<32x1xi32>
    %c0_i32_11 = arith.constant 0 : i32
    %14 = vector.broadcast %c0_i32_11 : i32 to vector<32x1xi32>
    %15 = arith.cmpi ne, %13, %14 : vector<32x1xi32>
    %c0_i32_12 = arith.constant 0 : i32
    %16 = vector.broadcast %c0_i32_12 : i32 to vector<32x1xi32>
    %17 = arith.cmpi slt, %13, %16 : vector<32x1xi32>
    %c0_i32_13 = arith.constant 0 : i32
    %18 = arith.cmpi slt, %11, %c0_i32_13 : i32
    %19 = vector.broadcast %18 : i1 to vector<32x1xi1>
    %20 = vector.broadcast %19 : vector<32x1xi1> to vector<32x1xi1>
    %21 = arith.xori %17, %20 : vector<32x1xi1>
    %22 = arith.andi %21, %15 : vector<32x1xi1>
    %23 = vector.broadcast %11 : i32 to vector<32x1xi32>
    %24 = arith.addi %13, %23 : vector<32x1xi32>
    %25 = arith.select %22, %24, %13 : vector<32x1xi1>, vector<32x1xi32>
    %c0_14 = arith.constant 0 : index
    %c0_15 = arith.constant 0 : index
    %26 = vector.load %arg3[%c0_14, %c0_15] : memref<8x128xf32, #tpu.memory_space<vmem>>, vector<8x128xf32>
    %c1_i32_16 = arith.constant 1 : i32
    %27 = tpu.dynamic_rotate %8 by %c1_i32_16 dim 0 : vector<32x128xf32>, i32 -> vector<32x128xf32>
    %c1_i32_17 = arith.constant 1 : i32
    %28 = vector.broadcast %c1_i32_17 : i32 to vector<32x1xi32>
    %29 = arith.cmpi sge, %25, %28 : vector<32x1xi32>
    %cst_18 = arith.constant 0.000000e+00 : f32
    %30 = vector.shape_cast %29 : vector<32x1xi1> to vector<32x1xi1>
    %31 = vector.broadcast %30 : vector<32x1xi1> to vector<32x128xi1>
    %32 = vector.broadcast %cst_18 : f32 to vector<32x128xf32>
    %33 = arith.select %31, %27, %32 : vector<32x128xi1>, vector<32x128xf32>
    %34 = arith.truncf %33 : vector<32x128xf32> to vector<32x128xbf16>
    %35 = arith.truncf %8 : vector<32x128xf32> to vector<32x128xbf16>
    %36 = tpu.concatenate %34, %35 in 1 : vector<32x128xbf16>, vector<32x128xbf16> -> vector<32x256xbf16>
    %c0_19 = arith.constant 0 : index
    %c0_20 = arith.constant 0 : index
    %37 = vector.load %arg2[%c0_19, %c0_20] : memref<1792x128xbf16, #tpu.memory_space<vmem>>, vector<256x128xbf16>
    %cst_21 = arith.constant dense<0.000000e+00> : vector<32x128xf32>
    %38 = tpu.matmul %36, %37, %cst_21 {dimension_numbers = #tpu.dot_dimension_numbers<[1], [0], [0], [1], [0, 0, 1, 1], [], []>} : vector<32x256xbf16>, vector<256x128xbf16>, vector<32x128xf32> -> vector<32x128xf32>
    %39 = vector.extract_strided_slice %26 {offsets = [0, 0], sizes = [1, 128], strides = [1, 1]} : vector<8x128xf32> to vector<1x128xf32>
    %40 = vector.broadcast %39 : vector<1x128xf32> to vector<32x128xf32>
    %41 = arith.addf %38, %40 : vector<32x128xf32>
    %cst_22 = arith.constant 0.000000e+00 : f32
    %42 = vector.broadcast %cst_22 : f32 to vector<32x128xf32>
    %43 = arith.maximumf %41, %42 : vector<32x128xf32>
    %c1_i32_23 = arith.constant 1 : i32
    %44 = tpu.dynamic_rotate %43 by %c1_i32_23 dim 0 : vector<32x128xf32>, i32 -> vector<32x128xf32>
    %c1_i32_24 = arith.constant 1 : i32
    %45 = vector.broadcast %c1_i32_24 : i32 to vector<32x1xi32>
    %46 = arith.cmpi sge, %25, %45 : vector<32x1xi32>
    %cst_25 = arith.constant 0.000000e+00 : f32
    %47 = vector.shape_cast %46 : vector<32x1xi1> to vector<32x1xi1>
    %48 = vector.broadcast %47 : vector<32x1xi1> to vector<32x128xi1>
    %49 = vector.broadcast %cst_25 : f32 to vector<32x128xf32>
    %50 = arith.select %48, %44, %49 : vector<32x128xi1>, vector<32x128xf32>
    %51 = arith.truncf %50 : vector<32x128xf32> to vector<32x128xbf16>
    %52 = arith.truncf %43 : vector<32x128xf32> to vector<32x128xbf16>
    %53 = tpu.concatenate %51, %52 in 1 : vector<32x128xbf16>, vector<32x128xbf16> -> vector<32x256xbf16>
    %c256 = arith.constant 256 : index
    %c0_26 = arith.constant 0 : index
    %54 = vector.load %arg2[%c256, %c0_26] : memref<1792x128xbf16, #tpu.memory_space<vmem>>, vector<256x128xbf16>
    %cst_27 = arith.constant dense<0.000000e+00> : vector<32x128xf32>
    %55 = tpu.matmul %53, %54, %cst_27 {dimension_numbers = #tpu.dot_dimension_numbers<[1], [0], [0], [1], [0, 0, 1, 1], [], []>} : vector<32x256xbf16>, vector<256x128xbf16>, vector<32x128xf32> -> vector<32x128xf32>
    %56 = vector.extract_strided_slice %26 {offsets = [1, 0], sizes = [1, 128], strides = [1, 1]} : vector<8x128xf32> to vector<1x128xf32>
    %57 = vector.broadcast %56 : vector<1x128xf32> to vector<32x128xf32>
    %58 = arith.addf %55, %57 : vector<32x128xf32>
    %cst_28 = arith.constant 0.000000e+00 : f32
    %59 = vector.broadcast %cst_28 : f32 to vector<32x128xf32>
    %60 = arith.maximumf %58, %59 : vector<32x128xf32>
    %c512 = arith.constant 512 : index
    %c0_29 = arith.constant 0 : index
    %61 = vector.load %arg2[%c512, %c0_29] : memref<1792x128xbf16, #tpu.memory_space<vmem>>, vector<128x128xbf16>
    %62 = arith.truncf %8 : vector<32x128xf32> to vector<32x128xbf16>
    %cst_30 = arith.constant dense<0.000000e+00> : vector<32x128xf32>
    %63 = tpu.matmul %62, %61, %cst_30 {dimension_numbers = #tpu.dot_dimension_numbers<[1], [0], [0], [1], [0, 0, 1, 1], [], []>} : vector<32x128xbf16>, vector<128x128xbf16>, vector<32x128xf32> -> vector<32x128xf32>
    %64 = vector.extract_strided_slice %26 {offsets = [2, 0], sizes = [1, 128], strides = [1, 1]} : vector<8x128xf32> to vector<1x128xf32>
    %65 = vector.broadcast %64 : vector<1x128xf32> to vector<32x128xf32>
    %66 = arith.addf %63, %65 : vector<32x128xf32>
    %67 = arith.addf %60, %66 : vector<32x128xf32>
    %cst_31 = arith.constant 0.000000e+00 : f32
    %68 = vector.broadcast %cst_31 : f32 to vector<32x128xf32>
    %69 = arith.maximumf %67, %68 : vector<32x128xf32>
    %c2_i32 = arith.constant 2 : i32
    %70 = tpu.dynamic_rotate %69 by %c2_i32 dim 0 : vector<32x128xf32>, i32 -> vector<32x128xf32>
    %c2_i32_32 = arith.constant 2 : i32
    %71 = vector.broadcast %c2_i32_32 : i32 to vector<32x1xi32>
    %72 = arith.cmpi sge, %25, %71 : vector<32x1xi32>
    %cst_33 = arith.constant 0.000000e+00 : f32
    %73 = vector.shape_cast %72 : vector<32x1xi1> to vector<32x1xi1>
    %74 = vector.broadcast %73 : vector<32x1xi1> to vector<32x128xi1>
    %75 = vector.broadcast %cst_33 : f32 to vector<32x128xf32>
    %76 = arith.select %74, %70, %75 : vector<32x128xi1>, vector<32x128xf32>
    %77 = arith.truncf %76 : vector<32x128xf32> to vector<32x128xbf16>
    %78 = arith.truncf %69 : vector<32x128xf32> to vector<32x128xbf16>
    %79 = tpu.concatenate %77, %78 in 1 : vector<32x128xbf16>, vector<32x128xbf16> -> vector<32x256xbf16>
    %c640 = arith.constant 640 : index
    %c0_34 = arith.constant 0 : index
    %80 = vector.load %arg2[%c640, %c0_34] : memref<1792x128xbf16, #tpu.memory_space<vmem>>, vector<256x128xbf16>
    %cst_35 = arith.constant dense<0.000000e+00> : vector<32x128xf32>
    %81 = tpu.matmul %79, %80, %cst_35 {dimension_numbers = #tpu.dot_dimension_numbers<[1], [0], [0], [1], [0, 0, 1, 1], [], []>} : vector<32x256xbf16>, vector<256x128xbf16>, vector<32x128xf32> -> vector<32x128xf32>
    %82 = vector.extract_strided_slice %26 {offsets = [3, 0], sizes = [1, 128], strides = [1, 1]} : vector<8x128xf32> to vector<1x128xf32>
    %83 = vector.broadcast %82 : vector<1x128xf32> to vector<32x128xf32>
    %84 = arith.addf %81, %83 : vector<32x128xf32>
    %cst_36 = arith.constant 0.000000e+00 : f32
    %85 = vector.broadcast %cst_36 : f32 to vector<32x128xf32>
    %86 = arith.maximumf %84, %85 : vector<32x128xf32>
    %c2_i32_37 = arith.constant 2 : i32
    %87 = tpu.dynamic_rotate %86 by %c2_i32_37 dim 0 : vector<32x128xf32>, i32 -> vector<32x128xf32>
    %c2_i32_38 = arith.constant 2 : i32
    %88 = vector.broadcast %c2_i32_38 : i32 to vector<32x1xi32>
    %89 = arith.cmpi sge, %25, %88 : vector<32x1xi32>
    %cst_39 = arith.constant 0.000000e+00 : f32
    %90 = vector.shape_cast %89 : vector<32x1xi1> to vector<32x1xi1>
    %91 = vector.broadcast %90 : vector<32x1xi1> to vector<32x128xi1>
    %92 = vector.broadcast %cst_39 : f32 to vector<32x128xf32>
    %93 = arith.select %91, %87, %92 : vector<32x128xi1>, vector<32x128xf32>
    %94 = arith.truncf %93 : vector<32x128xf32> to vector<32x128xbf16>
    %95 = arith.truncf %86 : vector<32x128xf32> to vector<32x128xbf16>
    %96 = tpu.concatenate %94, %95 in 1 : vector<32x128xbf16>, vector<32x128xbf16> -> vector<32x256xbf16>
    %c896 = arith.constant 896 : index
    %c0_40 = arith.constant 0 : index
    %97 = vector.load %arg2[%c896, %c0_40] : memref<1792x128xbf16, #tpu.memory_space<vmem>>, vector<256x128xbf16>
    %cst_41 = arith.constant dense<0.000000e+00> : vector<32x128xf32>
    %98 = tpu.matmul %96, %97, %cst_41 {dimension_numbers = #tpu.dot_dimension_numbers<[1], [0], [0], [1], [0, 0, 1, 1], [], []>} : vector<32x256xbf16>, vector<256x128xbf16>, vector<32x128xf32> -> vector<32x128xf32>
    %99 = vector.extract_strided_slice %26 {offsets = [4, 0], sizes = [1, 128], strides = [1, 1]} : vector<8x128xf32> to vector<1x128xf32>
    %100 = vector.broadcast %99 : vector<1x128xf32> to vector<32x128xf32>
    %101 = arith.addf %98, %100 : vector<32x128xf32>
    %cst_42 = arith.constant 0.000000e+00 : f32
    %102 = vector.broadcast %cst_42 : f32 to vector<32x128xf32>
    %103 = arith.maximumf %101, %102 : vector<32x128xf32>
    %104 = arith.addf %103, %69 : vector<32x128xf32>
    %cst_43 = arith.constant 0.000000e+00 : f32
    %105 = vector.broadcast %cst_43 : f32 to vector<32x128xf32>
    %106 = arith.maximumf %104, %105 : vector<32x128xf32>
    %c4_i32 = arith.constant 4 : i32
    %107 = tpu.dynamic_rotate %106 by %c4_i32 dim 0 : vector<32x128xf32>, i32 -> vector<32x128xf32>
    %c4_i32_44 = arith.constant 4 : i32
    %108 = vector.broadcast %c4_i32_44 : i32 to vector<32x1xi32>
    %109 = arith.cmpi sge, %25, %108 : vector<32x1xi32>
    %cst_45 = arith.constant 0.000000e+00 : f32
    %110 = vector.shape_cast %109 : vector<32x1xi1> to vector<32x1xi1>
    %111 = vector.broadcast %110 : vector<32x1xi1> to vector<32x128xi1>
    %112 = vector.broadcast %cst_45 : f32 to vector<32x128xf32>
    %113 = arith.select %111, %107, %112 : vector<32x128xi1>, vector<32x128xf32>
    %114 = arith.truncf %113 : vector<32x128xf32> to vector<32x128xbf16>
    %115 = arith.truncf %106 : vector<32x128xf32> to vector<32x128xbf16>
    %116 = tpu.concatenate %114, %115 in 1 : vector<32x128xbf16>, vector<32x128xbf16> -> vector<32x256xbf16>
    %c1152 = arith.constant 1152 : index
    %c0_46 = arith.constant 0 : index
    %117 = vector.load %arg2[%c1152, %c0_46] : memref<1792x128xbf16, #tpu.memory_space<vmem>>, vector<256x128xbf16>
    %cst_47 = arith.constant dense<0.000000e+00> : vector<32x128xf32>
    %118 = tpu.matmul %116, %117, %cst_47 {dimension_numbers = #tpu.dot_dimension_numbers<[1], [0], [0], [1], [0, 0, 1, 1], [], []>} : vector<32x256xbf16>, vector<256x128xbf16>, vector<32x128xf32> -> vector<32x128xf32>
    %119 = vector.extract_strided_slice %26 {offsets = [5, 0], sizes = [1, 128], strides = [1, 1]} : vector<8x128xf32> to vector<1x128xf32>
    %120 = vector.broadcast %119 : vector<1x128xf32> to vector<32x128xf32>
    %121 = arith.addf %118, %120 : vector<32x128xf32>
    %cst_48 = arith.constant 0.000000e+00 : f32
    %122 = vector.broadcast %cst_48 : f32 to vector<32x128xf32>
    %123 = arith.maximumf %121, %122 : vector<32x128xf32>
    %c4_i32_49 = arith.constant 4 : i32
    %124 = tpu.dynamic_rotate %123 by %c4_i32_49 dim 0 : vector<32x128xf32>, i32 -> vector<32x128xf32>
    %c4_i32_50 = arith.constant 4 : i32
    %125 = vector.broadcast %c4_i32_50 : i32 to vector<32x1xi32>
    %126 = arith.cmpi sge, %25, %125 : vector<32x1xi32>
    %cst_51 = arith.constant 0.000000e+00 : f32
    %127 = vector.shape_cast %126 : vector<32x1xi1> to vector<32x1xi1>
    %128 = vector.broadcast %127 : vector<32x1xi1> to vector<32x128xi1>
    %129 = vector.broadcast %cst_51 : f32 to vector<32x128xf32>
    %130 = arith.select %128, %124, %129 : vector<32x128xi1>, vector<32x128xf32>
    %131 = arith.truncf %130 : vector<32x128xf32> to vector<32x128xbf16>
    %132 = arith.truncf %123 : vector<32x128xf32> to vector<32x128xbf16>
    %133 = tpu.concatenate %131, %132 in 1 : vector<32x128xbf16>, vector<32x128xbf16> -> vector<32x256xbf16>
    %c1408 = arith.constant 1408 : index
    %c0_52 = arith.constant 0 : index
    %134 = vector.load %arg2[%c1408, %c0_52] : memref<1792x128xbf16, #tpu.memory_space<vmem>>, vector<256x128xbf16>
    %cst_53 = arith.constant dense<0.000000e+00> : vector<32x128xf32>
    %135 = tpu.matmul %133, %134, %cst_53 {dimension_numbers = #tpu.dot_dimension_numbers<[1], [0], [0], [1], [0, 0, 1, 1], [], []>} : vector<32x256xbf16>, vector<256x128xbf16>, vector<32x128xf32> -> vector<32x128xf32>
    %136 = vector.extract_strided_slice %26 {offsets = [6, 0], sizes = [1, 128], strides = [1, 1]} : vector<8x128xf32> to vector<1x128xf32>
    %137 = vector.broadcast %136 : vector<1x128xf32> to vector<32x128xf32>
    %138 = arith.addf %135, %137 : vector<32x128xf32>
    %cst_54 = arith.constant 0.000000e+00 : f32
    %139 = vector.broadcast %cst_54 : f32 to vector<32x128xf32>
    %140 = arith.maximumf %138, %139 : vector<32x128xf32>
    %c1664 = arith.constant 1664 : index
    %c0_55 = arith.constant 0 : index
    %141 = vector.load %arg2[%c1664, %c0_55] : memref<1792x128xbf16, #tpu.memory_space<vmem>>, vector<128x128xbf16>
    %142 = arith.truncf %106 : vector<32x128xf32> to vector<32x128xbf16>
    %cst_56 = arith.constant dense<0.000000e+00> : vector<32x128xf32>
    %143 = tpu.matmul %142, %141, %cst_56 {dimension_numbers = #tpu.dot_dimension_numbers<[1], [0], [0], [1], [0, 0, 1, 1], [], []>} : vector<32x128xbf16>, vector<128x128xbf16>, vector<32x128xf32> -> vector<32x128xf32>
    %144 = vector.extract_strided_slice %26 {offsets = [7, 0], sizes = [1, 128], strides = [1, 1]} : vector<8x128xf32> to vector<1x128xf32>
    %145 = vector.broadcast %144 : vector<1x128xf32> to vector<32x128xf32>
    %146 = arith.addf %143, %145 : vector<32x128xf32>
    %147 = arith.addf %140, %146 : vector<32x128xf32>
    %cst_57 = arith.constant 0.000000e+00 : f32
    %148 = vector.broadcast %cst_57 : f32 to vector<32x128xf32>
    %149 = arith.maximumf %147, %148 : vector<32x128xf32>
    %150 = vector.extract_strided_slice %149 {offsets = [0, 0], sizes = [16, 16], strides = [1, 1]} : vector<32x128xf32> to vector<16x16xf32>
    %c0_58 = arith.constant 0 : index
    %c0_59 = arith.constant 0 : index
    %c0_60 = arith.constant 0 : index
    %151 = vector.load %arg4[%c0_58, %c0_59, %c0_60] : memref<2x16x16xf32, #tpu.memory_space<vmem>>, vector<1x16x16xf32>
    %152 = vector.shape_cast %151 : vector<1x16x16xf32> to vector<16x16xf32>
    %153 = vector.shape_cast %150 : vector<16x16xf32> to vector<1x16x16xf32>
    tpu.vector_store %arg4[%c0_58, %c0_59, %c0_60], %153 {strides = array<i32>} : memref<2x16x16xf32, #tpu.memory_space<vmem>>, vector<1x16x16xf32>,
    %154 = vector.extract_strided_slice %149 {offsets = [16, 0], sizes = [16, 16], strides = [1, 1]} : vector<32x128xf32> to vector<16x16xf32>
    %c1_61 = arith.constant 1 : index
    %c0_62 = arith.constant 0 : index
    %c0_63 = arith.constant 0 : index
    %155 = vector.load %arg4[%c1_61, %c0_62, %c0_63] : memref<2x16x16xf32, #tpu.memory_space<vmem>>, vector<1x16x16xf32>
    %156 = vector.shape_cast %155 : vector<1x16x16xf32> to vector<16x16xf32>
    %157 = vector.shape_cast %154 : vector<16x16xf32> to vector<1x16x16xf32>
    tpu.vector_store %arg4[%c1_61, %c0_62, %c0_63], %157 {strides = array<i32>} : memref<2x16x16xf32, #tpu.memory_space<vmem>>, vector<1x16x16xf32>,
    return
  }
  func.func @transform_0(%arg0: i32) -> (i32, i32, i32) {
    %c0_i32 = arith.constant 0 : i32
    %c0_i32_0 = arith.constant 0 : i32
    %c0_i32_1 = arith.constant 0 : i32
    return %arg0, %c0_i32, %c0_i32_0 : i32, i32, i32
  }
  func.func @transform_1(%arg0: i32) -> (i32, i32) {
    %c0_i32 = arith.constant 0 : i32
    %c0_i32_0 = arith.constant 0 : i32
    %c0_i32_1 = arith.constant 0 : i32
    return %c0_i32, %c0_i32_0 : i32, i32
  }
  func.func @transform_2(%arg0: i32) -> (i32, i32) {
    %c0_i32 = arith.constant 0 : i32
    %c0_i32_0 = arith.constant 0 : i32
    %c0_i32_1 = arith.constant 0 : i32
    return %c0_i32, %c0_i32_0 : i32, i32
  }
  func.func @transform_3(%arg0: i32) -> (i32, i32, i32) {
    %c0_i32 = arith.constant 0 : i32
    %c0_i32_0 = arith.constant 0 : i32
    %c0_i32_1 = arith.constant 0 : i32
    return %arg0, %c0_i32, %c0_i32_0 : i32, i32, i32
  }
}

module attributes {stable_mosaic.version = 11 : i64} {
  func.func @_fused_tcn_kernel(%arg0: i32, %arg1: memref<2x16x4xf32, #tpu.memory_space<vmem>>, %arg2: memref<1792x128xbf16, #tpu.memory_space<vmem>>, %arg3: memref<8x128xf32, #tpu.memory_space<vmem>>, %arg4: memref<2x16x16xf32, #tpu.memory_space<vmem>>, %arg5: memref<32x128xf32, #tpu.memory_space<vmem>>) attributes {dimension_semantics = [#tpu.dimension_semantics<parallel>], iteration_bounds = array<i64: 2>, scalar_prefetch = 0 : i64, scratch_operands = 1 : i64, tpu.core_type = #tpu.core_type<tc>, window_params = [{transform_indices = @transform_0, window_bounds = array<i64: 2, 16, 4>}, {pipeline_mode = #tpu.pipeline_mode<synchronous>, transform_indices = @transform_1, window_bounds = array<i64: 1792, 128>}, {pipeline_mode = #tpu.pipeline_mode<synchronous>, transform_indices = @transform_2, window_bounds = array<i64: 8, 128>}, {transform_indices = @transform_3, window_bounds = array<i64: 2, 16, 16>}]} {
    %cst = arith.constant 0.000000e+00 : f32
    %0 = vector.broadcast %cst : f32 to vector<32x128xf32>
    %c0 = arith.constant 0 : index
    %c0_0 = arith.constant 0 : index
    %1 = vector.load %arg5[%c0, %c0_0] : memref<32x128xf32, #tpu.memory_space<vmem>>, vector<32x128xf32>
    tpu.vector_store %arg5[%c0, %c0_0], %0 {strides = array<i32>} : memref<32x128xf32, #tpu.memory_space<vmem>>, vector<32x128xf32>,
    %c0_1 = arith.constant 0 : index
    %c0_2 = arith.constant 0 : index
    %c0_3 = arith.constant 0 : index
    %2 = vector.load %arg1[%c0_1, %c0_2, %c0_3] : memref<2x16x4xf32, #tpu.memory_space<vmem>>, vector<1x16x4xf32>
    %3 = vector.shape_cast %2 : vector<1x16x4xf32> to vector<16x4xf32>
    %c0_4 = arith.constant 0 : index
    %c0_5 = arith.constant 0 : index
    %4 = vector.load %arg5[%c0_4, %c0_5] : memref<32x128xf32, #tpu.memory_space<vmem>>, vector<16x4xf32>
    tpu.vector_store %arg5[%c0_4, %c0_5], %3 {strides = array<i32>} : memref<32x128xf32, #tpu.memory_space<vmem>>, vector<16x4xf32>,
    %c1 = arith.constant 1 : index
    %c0_6 = arith.constant 0 : index
    %c0_7 = arith.constant 0 : index
    %5 = vector.load %arg1[%c1, %c0_6, %c0_7] : memref<2x16x4xf32, #tpu.memory_space<vmem>>, vector<1x16x4xf32>
    %6 = vector.shape_cast %5 : vector<1x16x4xf32> to vector<16x4xf32>
    %c16 = arith.constant 16 : index
    %c0_8 = arith.constant 0 : index
    %7 = vector.load %arg5[%c16, %c0_8] : memref<32x128xf32, #tpu.memory_space<vmem>>, vector<16x4xf32>
    tpu.vector_store %arg5[%c16, %c0_8], %6 {strides = array<i32>} : memref<32x128xf32, #tpu.memory_space<vmem>>, vector<16x4xf32>,
    %c0_9 = arith.constant 0 : index
    %c0_10 = arith.constant 0 : index
    %8 = vector.load %arg5[%c0_9, %c0_10] : memref<32x128xf32, #tpu.memory_space<vmem>>, vector<32x128xf32>
    %9 = tpu.iota {dimensions = array<i32: 0>} : vector<32x1xi32>
    %c16_i32 = arith.constant 16 : i32
    %c0_i32 = arith.constant 0 : i32
    %10 = arith.cmpi eq, %c16_i32, %c0_i32 : i32
    %c1_i32 = arith.constant 1 : i32
    %11 = arith.select %10, %c1_i32, %c16_i32 : i32
    %12 = vector.broadcast %11 : i32 to vector<32x1xi32>
    %13 = arith.remsi %9, %12 : vector<32x1xi32>
    %c0_i32_11 = arith.constant 0 : i32
    %14 = vector.broadcast %c0_i32_11 : i32 to vector<32x1xi32>
    %15 = arith.cmpi ne, %13, %14 : vector<32x1xi32>
    %c0_i32_12 = arith.constant 0 : i32
    %16 = vector.broadcast %c0_i32_12 : i32 to vector<32x1xi32>
    %17 = arith.cmpi slt, %13, %16 : vector<32x1xi32>
    %c0_i32_13 = arith.constant 0 : i32
    %18 = arith.cmpi slt, %11, %c0_i32_13 : i32
    %19 = vector.broadcast %18 : i1 to vector<32x1xi1>
    %20 = vector.broadcast %19 : vector<32x1xi1> to vector<32x1xi1>
    %21 = arith.xori %17, %20 : vector<32x1xi1>
    %22 = arith.andi %21, %15 : vector<32x1xi1>
    %23 = vector.broadcast %11 : i32 to vector<32x1xi32>
    %24 = arith.addi %13, %23 : vector<32x1xi32>
    %25 = arith.select %22, %24, %13 : vector<32x1xi1>, vector<32x1xi32>
    %c0_14 = arith.constant 0 : index
    %c0_15 = arith.constant 0 : index
    %26 = vector.load %arg3[%c0_14, %c0_15] : memref<8x128xf32, #tpu.memory_space<vmem>>, vector<8x128xf32>
    %c1_i32_16 = arith.constant 1 : i32
    %27 = tpu.dynamic_rotate %8 by %c1_i32_16 dim 0 : vector<32x128xf32>, i32 -> vector<32x128xf32>
    %c1_i32_17 = arith.constant 1 : i32
    %28 = vector.broadcast %c1_i32_17 : i32 to vector<32x1xi32>
    %29 = arith.cmpi sge, %25, %28 : vector<32x1xi32>
    %cst_18 = arith.constant 0.000000e+00 : f32
    %30 = vector.shape_cast %29 : vector<32x1xi1> to vector<32x1xi1>
    %31 = vector.broadcast %30 : vector<32x1xi1> to vector<32x128xi1>
    %32 = vector.broadcast %cst_18 : f32 to vector<32x128xf32>
    %33 = arith.select %31, %27, %32 : vector<32x128xi1>, vector<32x128xf32>
    %34 = arith.truncf %33 : vector<32x128xf32> to vector<32x128xbf16>
    %35 = arith.truncf %8 : vector<32x128xf32> to vector<32x128xbf16>
    %36 = tpu.concatenate %34, %35 in 1 : vector<32x128xbf16>, vector<32x128xbf16> -> vector<32x256xbf16>
    %c0_19 = arith.constant 0 : index
    %c0_20 = arith.constant 0 : index
    %37 = vector.load %arg2[%c0_19, %c0_20] : memref<1792x128xbf16, #tpu.memory_space<vmem>>, vector<256x128xbf16>
    %cst_21 = arith.constant dense<0.000000e+00> : vector<32x128xf32>
    %38 = tpu.matmul %36, %37, %cst_21 {dimension_numbers = #tpu.dot_dimension_numbers<[1], [0], [0], [1], [0, 0, 1, 1], [], []>} : vector<32x256xbf16>, vector<256x128xbf16>, vector<32x128xf32> -> vector<32x128xf32>
    %39 = vector.extract_strided_slice %26 {offsets = [0, 0], sizes = [1, 128], strides = [1, 1]} : vector<8x128xf32> to vector<1x128xf32>
    %40 = vector.broadcast %39 : vector<1x128xf32> to vector<32x128xf32>
    %41 = arith.addf %38, %40 : vector<32x128xf32>
    %cst_22 = arith.constant 0.000000e+00 : f32
    %42 = vector.broadcast %cst_22 : f32 to vector<32x128xf32>
    %43 = arith.maximumf %41, %42 : vector<32x128xf32>
    %c1_i32_23 = arith.constant 1 : i32
    %44 = tpu.dynamic_rotate %43 by %c1_i32_23 dim 0 : vector<32x128xf32>, i32 -> vector<32x128xf32>
    %c1_i32_24 = arith.constant 1 : i32
    %45 = vector.broadcast %c1_i32_24 : i32 to vector<32x1xi32>
    %46 = arith.cmpi sge, %25, %45 : vector<32x1xi32>
    %cst_25 = arith.constant 0.000000e+00 : f32
    %47 = vector.shape_cast %46 : vector<32x1xi1> to vector<32x1xi1>
    %48 = vector.broadcast %47 : vector<32x1xi1> to vector<32x128xi1>
    %49 = vector.broadcast %cst_25 : f32 to vector<32x128xf32>
    %50 = arith.select %48, %44, %49 : vector<32x128xi1>, vector<32x128xf32>
    %51 = arith.truncf %50 : vector<32x128xf32> to vector<32x128xbf16>
    %52 = arith.truncf %43 : vector<32x128xf32> to vector<32x128xbf16>
    %53 = tpu.concatenate %51, %52 in 1 : vector<32x128xbf16>, vector<32x128xbf16> -> vector<32x256xbf16>
    %c256 = arith.constant 256 : index
    %c0_26 = arith.constant 0 : index
    %54 = vector.load %arg2[%c256, %c0_26] : memref<1792x128xbf16, #tpu.memory_space<vmem>>, vector<256x128xbf16>
    %cst_27 = arith.constant dense<0.000000e+00> : vector<32x128xf32>
    %55 = tpu.matmul %53, %54, %cst_27 {dimension_numbers = #tpu.dot_dimension_numbers<[1], [0], [0], [1], [0, 0, 1, 1], [], []>} : vector<32x256xbf16>, vector<256x128xbf16>, vector<32x128xf32> -> vector<32x128xf32>
    %56 = vector.extract_strided_slice %26 {offsets = [1, 0], sizes = [1, 128], strides = [1, 1]} : vector<8x128xf32> to vector<1x128xf32>
    %57 = vector.broadcast %56 : vector<1x128xf32> to vector<32x128xf32>
    %58 = arith.addf %55, %57 : vector<32x128xf32>
    %cst_28 = arith.constant 0.000000e+00 : f32
    %59 = vector.broadcast %cst_28 : f32 to vector<32x128xf32>
    %60 = arith.maximumf %58, %59 : vector<32x128xf32>
    %c512 = arith.constant 512 : index
    %c0_29 = arith.constant 0 : index
    %61 = vector.load %arg2[%c512, %c0_29] : memref<1792x128xbf16, #tpu.memory_space<vmem>>, vector<128x128xbf16>
    %62 = arith.truncf %8 : vector<32x128xf32> to vector<32x128xbf16>
    %cst_30 = arith.constant dense<0.000000e+00> : vector<32x128xf32>
    %63 = tpu.matmul %62, %61, %cst_30 {dimension_numbers = #tpu.dot_dimension_numbers<[1], [0], [0], [1], [0, 0, 1, 1], [], []>} : vector<32x128xbf16>, vector<128x128xbf16>, vector<32x128xf32> -> vector<32x128xf32>
    %64 = vector.extract_strided_slice %26 {offsets = [2, 0], sizes = [1, 128], strides = [1, 1]} : vector<8x128xf32> to vector<1x128xf32>
    %65 = vector.broadcast %64 : vector<1x128xf32> to vector<32x128xf32>
    %66 = arith.addf %63, %65 : vector<32x128xf32>
    %67 = arith.addf %60, %66 : vector<32x128xf32>
    %cst_31 = arith.constant 0.000000e+00 : f32
    %68 = vector.broadcast %cst_31 : f32 to vector<32x128xf32>
    %69 = arith.maximumf %67, %68 : vector<32x128xf32>
    %c2_i32 = arith.constant 2 : i32
    %70 = tpu.dynamic_rotate %69 by %c2_i32 dim 0 : vector<32x128xf32>, i32 -> vector<32x128xf32>
    %c2_i32_32 = arith.constant 2 : i32
    %71 = vector.broadcast %c2_i32_32 : i32 to vector<32x1xi32>
    %72 = arith.cmpi sge, %25, %71 : vector<32x1xi32>
    %cst_33 = arith.constant 0.000000e+00 : f32
    %73 = vector.shape_cast %72 : vector<32x1xi1> to vector<32x1xi1>
    %74 = vector.broadcast %73 : vector<32x1xi1> to vector<32x128xi1>
    %75 = vector.broadcast %cst_33 : f32 to vector<32x128xf32>
    %76 = arith.select %74, %70, %75 : vector<32x128xi1>, vector<32x128xf32>
    %77 = arith.truncf %76 : vector<32x128xf32> to vector<32x128xbf16>
    %78 = arith.truncf %69 : vector<32x128xf32> to vector<32x128xbf16>
    %79 = tpu.concatenate %77, %78 in 1 : vector<32x128xbf16>, vector<32x128xbf16> -> vector<32x256xbf16>
    %c640 = arith.constant 640 : index
    %c0_34 = arith.constant 0 : index
    %80 = vector.load %arg2[%c640, %c0_34] : memref<1792x128xbf16, #tpu.memory_space<vmem>>, vector<256x128xbf16>
    %cst_35 = arith.constant dense<0.000000e+00> : vector<32x128xf32>
    %81 = tpu.matmul %79, %80, %cst_35 {dimension_numbers = #tpu.dot_dimension_numbers<[1], [0], [0], [1], [0, 0, 1, 1], [], []>} : vector<32x256xbf16>, vector<256x128xbf16>, vector<32x128xf32> -> vector<32x128xf32>
    %82 = vector.extract_strided_slice %26 {offsets = [3, 0], sizes = [1, 128], strides = [1, 1]} : vector<8x128xf32> to vector<1x128xf32>
    %83 = vector.broadcast %82 : vector<1x128xf32> to vector<32x128xf32>
    %84 = arith.addf %81, %83 : vector<32x128xf32>
    %cst_36 = arith.constant 0.000000e+00 : f32
    %85 = vector.broadcast %cst_36 : f32 to vector<32x128xf32>
    %86 = arith.maximumf %84, %85 : vector<32x128xf32>
    %c2_i32_37 = arith.constant 2 : i32
    %87 = tpu.dynamic_rotate %86 by %c2_i32_37 dim 0 : vector<32x128xf32>, i32 -> vector<32x128xf32>
    %c2_i32_38 = arith.constant 2 : i32
    %88 = vector.broadcast %c2_i32_38 : i32 to vector<32x1xi32>
    %89 = arith.cmpi sge, %25, %88 : vector<32x1xi32>
    %cst_39 = arith.constant 0.000000e+00 : f32
    %90 = vector.shape_cast %89 : vector<32x1xi1> to vector<32x1xi1>
    %91 = vector.broadcast %90 : vector<32x1xi1> to vector<32x128xi1>
    %92 = vector.broadcast %cst_39 : f32 to vector<32x128xf32>
    %93 = arith.select %91, %87, %92 : vector<32x128xi1>, vector<32x128xf32>
    %94 = arith.truncf %93 : vector<32x128xf32> to vector<32x128xbf16>
    %95 = arith.truncf %86 : vector<32x128xf32> to vector<32x128xbf16>
    %96 = tpu.concatenate %94, %95 in 1 : vector<32x128xbf16>, vector<32x128xbf16> -> vector<32x256xbf16>
    %c896 = arith.constant 896 : index
    %c0_40 = arith.constant 0 : index
    %97 = vector.load %arg2[%c896, %c0_40] : memref<1792x128xbf16, #tpu.memory_space<vmem>>, vector<256x128xbf16>
    %cst_41 = arith.constant dense<0.000000e+00> : vector<32x128xf32>
    %98 = tpu.matmul %96, %97, %cst_41 {dimension_numbers = #tpu.dot_dimension_numbers<[1], [0], [0], [1], [0, 0, 1, 1], [], []>} : vector<32x256xbf16>, vector<256x128xbf16>, vector<32x128xf32> -> vector<32x128xf32>
    %99 = vector.extract_strided_slice %26 {offsets = [4, 0], sizes = [1, 128], strides = [1, 1]} : vector<8x128xf32> to vector<1x128xf32>
    %100 = vector.broadcast %99 : vector<1x128xf32> to vector<32x128xf32>
    %101 = arith.addf %98, %100 : vector<32x128xf32>
    %cst_42 = arith.constant 0.000000e+00 : f32
    %102 = vector.broadcast %cst_42 : f32 to vector<32x128xf32>
    %103 = arith.maximumf %101, %102 : vector<32x128xf32>
    %104 = arith.addf %103, %69 : vector<32x128xf32>
    %cst_43 = arith.constant 0.000000e+00 : f32
    %105 = vector.broadcast %cst_43 : f32 to vector<32x128xf32>
    %106 = arith.maximumf %104, %105 : vector<32x128xf32>
    %c4_i32 = arith.constant 4 : i32
    %107 = tpu.dynamic_rotate %106 by %c4_i32 dim 0 : vector<32x128xf32>, i32 -> vector<32x128xf32>
    %c4_i32_44 = arith.constant 4 : i32
    %108 = vector.broadcast %c4_i32_44 : i32 to vector<32x1xi32>
    %109 = arith.cmpi sge, %25, %108 : vector<32x1xi32>
    %cst_45 = arith.constant 0.000000e+00 : f32
    %110 = vector.shape_cast %109 : vector<32x1xi1> to vector<32x1xi1>
    %111 = vector.broadcast %110 : vector<32x1xi1> to vector<32x128xi1>
    %112 = vector.broadcast %cst_45 : f32 to vector<32x128xf32>
    %113 = arith.select %111, %107, %112 : vector<32x128xi1>, vector<32x128xf32>
    %114 = arith.truncf %113 : vector<32x128xf32> to vector<32x128xbf16>
    %115 = arith.truncf %106 : vector<32x128xf32> to vector<32x128xbf16>
    %116 = tpu.concatenate %114, %115 in 1 : vector<32x128xbf16>, vector<32x128xbf16> -> vector<32x256xbf16>
    %c1152 = arith.constant 1152 : index
    %c0_46 = arith.constant 0 : index
    %117 = vector.load %arg2[%c1152, %c0_46] : memref<1792x128xbf16, #tpu.memory_space<vmem>>, vector<256x128xbf16>
    %cst_47 = arith.constant dense<0.000000e+00> : vector<32x128xf32>
    %118 = tpu.matmul %116, %117, %cst_47 {dimension_numbers = #tpu.dot_dimension_numbers<[1], [0], [0], [1], [0, 0, 1, 1], [], []>} : vector<32x256xbf16>, vector<256x128xbf16>, vector<32x128xf32> -> vector<32x128xf32>
    %119 = vector.extract_strided_slice %26 {offsets = [5, 0], sizes = [1, 128], strides = [1, 1]} : vector<8x128xf32> to vector<1x128xf32>
    %120 = vector.broadcast %119 : vector<1x128xf32> to vector<32x128xf32>
    %121 = arith.addf %118, %120 : vector<32x128xf32>
    %cst_48 = arith.constant 0.000000e+00 : f32
    %122 = vector.broadcast %cst_48 : f32 to vector<32x128xf32>
    %123 = arith.maximumf %121, %122 : vector<32x128xf32>
    %c4_i32_49 = arith.constant 4 : i32
    %124 = tpu.dynamic_rotate %123 by %c4_i32_49 dim 0 : vector<32x128xf32>, i32 -> vector<32x128xf32>
    %c4_i32_50 = arith.constant 4 : i32
    %125 = vector.broadcast %c4_i32_50 : i32 to vector<32x1xi32>
    %126 = arith.cmpi sge, %25, %125 : vector<32x1xi32>
    %cst_51 = arith.constant 0.000000e+00 : f32
    %127 = vector.shape_cast %126 : vector<32x1xi1> to vector<32x1xi1>
    %128 = vector.broadcast %127 : vector<32x1xi1> to vector<32x128xi1>
    %129 = vector.broadcast %cst_51 : f32 to vector<32x128xf32>
    %130 = arith.select %128, %124, %129 : vector<32x128xi1>, vector<32x128xf32>
    %131 = arith.truncf %130 : vector<32x128xf32> to vector<32x128xbf16>
    %132 = arith.truncf %123 : vector<32x128xf32> to vector<32x128xbf16>
    %133 = tpu.concatenate %131, %132 in 1 : vector<32x128xbf16>, vector<32x128xbf16> -> vector<32x256xbf16>
    %c1408 = arith.constant 1408 : index
    %c0_52 = arith.constant 0 : index
    %134 = vector.load %arg2[%c1408, %c0_52] : memref<1792x128xbf16, #tpu.memory_space<vmem>>, vector<256x128xbf16>
    %cst_53 = arith.constant dense<0.000000e+00> : vector<32x128xf32>
    %135 = tpu.matmul %133, %134, %cst_53 {dimension_numbers = #tpu.dot_dimension_numbers<[1], [0], [0], [1], [0, 0, 1, 1], [], []>} : vector<32x256xbf16>, vector<256x128xbf16>, vector<32x128xf32> -> vector<32x128xf32>
    %136 = vector.extract_strided_slice %26 {offsets = [6, 0], sizes = [1, 128], strides = [1, 1]} : vector<8x128xf32> to vector<1x128xf32>
    %137 = vector.broadcast %136 : vector<1x128xf32> to vector<32x128xf32>
    %138 = arith.addf %135, %137 : vector<32x128xf32>
    %cst_54 = arith.constant 0.000000e+00 : f32
    %139 = vector.broadcast %cst_54 : f32 to vector<32x128xf32>
    %140 = arith.maximumf %138, %139 : vector<32x128xf32>
    %c1664 = arith.constant 1664 : index
    %c0_55 = arith.constant 0 : index
    %141 = vector.load %arg2[%c1664, %c0_55] : memref<1792x128xbf16, #tpu.memory_space<vmem>>, vector<128x128xbf16>
    %142 = arith.truncf %106 : vector<32x128xf32> to vector<32x128xbf16>
    %cst_56 = arith.constant dense<0.000000e+00> : vector<32x128xf32>
    %143 = tpu.matmul %142, %141, %cst_56 {dimension_numbers = #tpu.dot_dimension_numbers<[1], [0], [0], [1], [0, 0, 1, 1], [], []>} : vector<32x128xbf16>, vector<128x128xbf16>, vector<32x128xf32> -> vector<32x128xf32>
    %144 = vector.extract_strided_slice %26 {offsets = [7, 0], sizes = [1, 128], strides = [1, 1]} : vector<8x128xf32> to vector<1x128xf32>
    %145 = vector.broadcast %144 : vector<1x128xf32> to vector<32x128xf32>
    %146 = arith.addf %143, %145 : vector<32x128xf32>
    %147 = arith.addf %140, %146 : vector<32x128xf32>
    %cst_57 = arith.constant 0.000000e+00 : f32
    %148 = vector.broadcast %cst_57 : f32 to vector<32x128xf32>
    %149 = arith.maximumf %147, %148 : vector<32x128xf32>
    %150 = vector.extract_strided_slice %149 {offsets = [0, 0], sizes = [16, 16], strides = [1, 1]} : vector<32x128xf32> to vector<16x16xf32>
    %c0_58 = arith.constant 0 : index
    %c0_59 = arith.constant 0 : index
    %c0_60 = arith.constant 0 : index
    %151 = vector.load %arg4[%c0_58, %c0_59, %c0_60] : memref<2x16x16xf32, #tpu.memory_space<vmem>>, vector<1x16x16xf32>
    %152 = vector.shape_cast %151 : vector<1x16x16xf32> to vector<16x16xf32>
    %153 = vector.shape_cast %150 : vector<16x16xf32> to vector<1x16x16xf32>
    tpu.vector_store %arg4[%c0_58, %c0_59, %c0_60], %153 {strides = array<i32>} : memref<2x16x16xf32, #tpu.memory_space<vmem>>, vector<1x16x16xf32>,
    %154 = vector.extract_strided_slice %149 {offsets = [16, 0], sizes = [16, 16], strides = [1, 1]} : vector<32x128xf32> to vector<16x16xf32>
    %c1_61 = arith.constant 1 : index
    %c0_62 = arith.constant 0 : index
    %c0_63 = arith.constant 0 : index
    %155 = vector.load %arg4[%c1_61, %c0_62, %c0_63] : memref<2x16x16xf32, #tpu.memory_space<vmem>>, vector<1x16x16xf32>
    %156 = vector.shape_cast %155 : vector<1x16x16xf32> to vector<16x16xf32>
    %157 = vector.shape_cast %154 : vector<16x16xf32> to vector<1x16x16xf32>
    tpu.vector_store %arg4[%c1_61, %c0_62, %c0_63], %157 {strides = array<i32>} : memref<2x16x16xf32, #tpu.memory_space<vmem>>, vector<1x16x16xf32>,
    return
  }
  func.func @transform_0(%arg0: i32) -> (i32, i32, i32) {
    %c0_i32 = arith.constant 0 : i32
    %c0_i32_0 = arith.constant 0 : i32
    %c0_i32_1 = arith.constant 0 : i32
    return %arg0, %c0_i32, %c0_i32_0 : i32, i32, i32
  }
  func.func @transform_1(%arg0: i32) -> (i32, i32) {
    %c0_i32 = arith.constant 0 : i32
    %c0_i32_0 = arith.constant 0 : i32
    %c0_i32_1 = arith.constant 0 : i32
    return %c0_i32, %c0_i32_0 : i32, i32
  }
  func.func @transform_2(%arg0: i32) -> (i32, i32) {
    %c0_i32 = arith.constant 0 : i32
    %c0_i32_0 = arith.constant 0 : i32
    %c0_i32_1 = arith.constant 0 : i32
    return %c0_i32, %c0_i32_0 : i32, i32
  }
  func.func @transform_3(%arg0: i32) -> (i32, i32, i32) {
    %c0_i32 = arith.constant 0 : i32
    %c0_i32_0 = arith.constant 0 : i32
    %c0_i32_1 = arith.constant 0 : i32
    return %arg0, %c0_i32, %c0_i32_0 : i32, i32, i32
  }
}

</mosaic_0001>

<bundles_post_ra>
// kernel: tpu_custom_call.1
= control target key start
LH: loop header
LB: loop body
LE: loop exit
PB: predicated region body
PF: predicated region fallthrough
CT: control target
= control target key end

     0   :  { %8 = vsyncpa [#allocation4], 0  ;;  %s2843_s0 = inlined_call_operand.vmem [shape: f32[4,16,4], index: 0, kind: input, shape index: {}]   ;;  %s2844_s1 = inlined_call_operand.hbm [shape: bf16[1792,128], index: 1, kind: input, shape index: {}]   ;;  %s2845_s2 = inlined_call_operand.vmem [shape: f32[8,128], index: 2, kind: input, shape index: {}]   ;;  %s2846_s3 = inlined_call_operand.hbm [shape: f32[4,16,16], index: 3, kind: output, shape index: {}]  }
   0x1   :  { %9 = vsyncpa [#allocation5], 0 }
   0x2   :  { %11 = vsyncpa [#allocation5 + $0x1], 0  ;;  %s2548_s12 = smov 0   ;;  %s2550_s13 = smov 0  }
   0x3   :  { %s2552_s14 = smov 0   ;;  %s2554_s15 = smov 0  }
   0x4 LB: > { %s2569_s16 = sadd.s32 4294967295, %s2518_s15   ;;  %s1861_s17 = sadd.s32 4294967294, %s2518_s15   ;;  %s2518_s15 = sphi %s2554_s15, %s2866_s15   ;;  %s2514_s14 = sphi %s2552_s14, %s2865_s14   ;;  %s2510_s13 = sphi %s2550_s13, %s2864_s13   ;;  %s2506_s12 = sphi %s2548_s12, %s2863_s12  }
   0x5   : > { %s2573_s18 = sadd.s32 1, %s2518_s15   ;;  %s92_s19 = sadd.s32 1, %s2514_s14 }
   0x6   : > { %s89_s20 = ssub.s32 %s2518_s15, %s2573_s18  ;;  %p102_p0 = scmp.ne.s32.totalorder %s2514_s14, %s2510_s13 }
   0x7   : > { %p90_p1 = scmp.eq.s32.totalorder %s89_s20, 0  ;;  %p103_p2 = scmp.eq.s32.totalorder %s2569_s16, 1 }
   0x8   : > { %p108_p3 = scmp.ne.s32.totalorder %s2510_s13, %s2506_s12  ;;  %p109_p4 = scmp.eq.s32.totalorder %s1861_s17, 1 }
   0x9   : > { %s2584_s21 = scalar_select %p90_p1, %s2514_s14, %s92_s19  }
   0xa   : > { %p2586_p5 = por %p103_p2, %p102_p0  ;;  %p2590_p6 = por %p109_p4, %p108_p3 }
   0xb   : > { %p1862_p7 = scmp.ge.s32.totalorder %s2518_s15, 1  ;;  %p116_p8 = scmp.lt.s32.totalorder %s2518_s15, 3 }
   0xc   : > { %s2848_s23 = scalar_select %p2590_p6, 1, 0 }
   0xd   : > { %p2274_p9 = scmp.eq.s32.totalorder %s2569_s16, 0  ;;  %p2597_p10 = pnand %p1862_p7, %p116_p8 }
   0xe   : > { %s2520_s25 = smov [#allocation3]  }
   0xf   : > { %s128_s26 = sshll.u32 %s2520_s25, 4  ;;  %p2266_p11 = pneg %p2597_p10  ;;  %s129_s26 = int_to_ptr.vmem [resolvable:$true] %s128_s26 }
  0x10   : > { %s2439_s27 = scalar_lea.vmem %s129_s26, 14336  ;;  %p2447_p3 = scmp.lt.s32.totalorder %s129_s26, %s129_s26 }
  0x11   : > { %p2267_p12 = pnand %p2274_p9, %p2266_p11  ;;  %p2440_p0 = scmp.ne.s32.totalorder %s129_s26, %s2439_s27 }
  0x12   : > { %p2448_p4 = scmp.lt.s32.totalorder %s2439_s27, %s2439_s27 }
  0x13   : > { %p2430_p13 = pneg %p2267_p12 }
  0x14   : > { %p2449_p6 = por %p2448_p4, %p2447_p3 }
  0x15   : > { %p2442_p1 = pnand %p2440_p0, %p2430_p13 }
  0x17   : > { %p2443_p2 = pneg %p2442_p1 }
  0x19   : > { %p2450_p7 = pnand %p2449_p6, %p2443_p2 }
  0x1b   : > { %2453 = shalt.err (!%p2450_p7)
}
  0x1c   : > { %s2521_s28 = smov 64   ;;  %s2522_s29 = smov 4  }
  0x1d   : > { %2269 = dma.hbm_to_vmem [thread:$0]  (!%p2267_p12), %s2844_s1, 14336, %s129_s26, [#allocation4], %s2521_s28, %s2521_s28, %s2522_s29  }
  0x1e   : > { %157 = sbr.rel (%p2597_p10) target bundleno = 1398 (0x576), region = 32 }
  0x23   : > { %2497 = dma.done.wait (%p2274_p9), [#allocation4], 14336  }
  0x24   : > { %2499 = vsyncadd (%p2274_p9), [#allocation4], 4294952960  ;;  %v2523_v0 = vmov 0.0   ;;  %s1868_s5 = sshll.u32 %s2569_s16, 1  ;;  %v2316_v1 = vld [vmem:[#allocation3 + $0x78] sm:$0xff]   ;;  %v2318_v3 = vld [vmem:[#allocation3 + $0x70] sm:$0xff]   ;;  %v209_v8 = vlaneseq }
  0x25   : > { %191 = vst [vmem:[#allocation2] sm:$0xff] %v2523_v0  ;;  %192 = vst [vmem:[#allocation2 + $0x8] sm:$0xff] %v2523_v0  ;;  %v2317_v2 = vld [vmem:[#allocation3 + $0x38] sm:$0xff]   ;;  %2032 = vmatprep.subr.bf16.mxu0 %v2316_v1  ;;  %p183_p6 = scmp.lt.s32.totalorder %s1868_s5, 3  ;;  %v2319_v4 = vld [vmem:[#allocation3 + $0x30] sm:$0xff]   ;;  %vm197_vm0 = vcmask 31744  }
  0x26   : > { %194 = vst [vmem:[#allocation2 + $0x18] sm:$0xff] %v2523_v0  ;;  %193 = vst [vmem:[#allocation2 + $0x10] sm:$0xff] %v2523_v0  ;;  %2033 = vmatpush3.bf16.msra.mxu0 %v2317_v2  ;;  %v2320_v5 = vld [vmem:[#allocation3 + $0x68] sm:$0xff]   ;;  %v2322_v7 = vld [vmem:[#allocation3 + $0x60] sm:$0xff]   ;;  %v2618_v12 = vshrl.u32 %v209_v8, 7  ;;  %vm2524_vm4 = vmmov 1  }
  0x27   : > { %2034 = vmatprep.subr.bf16.mxu0 %v2318_v3  ;;  %s2868_s5 = smov (!%p183_p6, %s1868_s5), 3  ;;  %v2321_v6 = vld [vmem:[#allocation3 + $0x28] sm:$0xff]   ;;  %v2323_v9 = vld [vmem:[#allocation3 + $0x20] sm:$0xff]   ;;  %v2324_v10 = vld [vmem:[#allocation3 + $0x58] sm:$0xff]   ;;  %s179_s17 = sand.u32 1, %s2510_s13  }
  0x28   : > { %s2029_s6 = sshll.u32 %s2868_s5, 4  ;;  %v2325_v11 = vld [vmem:[#allocation3 + $0x18] sm:$0xff]   ;;  %v2326_v13 = vld [vmem:[#allocation3 + $0x50] sm:$0xff]   ;;  %v212_v17 = vadd.s32 16, %v2618_v12  ;;  %v2328_v20 = vld [vmem:[#allocation3 + $0x48] sm:$0xff]   ;;  %v2625_v21 = vand.u32 15, %v2618_v12 }
  0x29   : > { %s187_s9 = scalar_lea.vmem %s2843_s0, %s2029_s6  ;;  %v2327_v18 = vld [vmem:[#allocation3 + $0x10] sm:$0xff]   ;;  %v2332_v22 = vld [vmem:[#allocation3 + $0xf8] sm:$0xff]   ;;  %v2329_v26 = vld [vmem:[#allocation3 + $0x8] sm:$0xff]   ;;  %vm267_vm2 = vcmp.lt.s32.totalorder %v2618_v12, 1  ;;  %vm807_vm7 = vcmp.lt.s32.totalorder %v2618_v12, 2  ;;  %vm1230_vm12 = vcmp.lt.s32.totalorder %v2618_v12, 4 }
  0x2a   : > { %2035 = vmatpush3.bf16.msra.mxu0 %v2319_v4  ;;  %v195_v14 = vld [vmem:[%s187_s9] sm:$0xff]  ;;  %v196_v15 = vld [vmem:[%s187_s9 + $0x8] sm:$0xff]  ;;  %v1872_v16 = vld [vmem:[%s187_s9 + $0x18] sm:$0xff]  ;;  %v2628_v24 = vand.u32 15, %v212_v17  ;;  %2060 = vmatprep.subr.bf16.mxu1 %v2332_v22  ;;  %vm272_vm1 = vcmp.ge.s32.totalorder %v2625_v21, 1  ;;  %vm812_vm8 = vcmp.ge.s32.totalorder %v2625_v21, 2 }
  0x2b   : > { %2036 = vmatprep.subr.bf16.mxu0 %v2320_v5  ;;  %198 = vst.msk [vmem:[#allocation2] sm:$0xff] %vm197_vm0, %v195_v14  ;;  %199 = vst.msk [vmem:[#allocation2 + $0x8] sm:$0xff] %vm197_vm0, %v196_v15  ;;  %v1871_v19 = vld [vmem:[%s187_s9 + $0x10] sm:$0xff]  ;;  %v2333_v23 = vld [vmem:[#allocation3 + $0xb8] sm:$0xff]   ;;  %v326_v5 = vsub.s32 0, %v2618_v12  ;;  %vm1235_vm13 = vcmp.ge.s32.totalorder %v2625_v21, 4 }
  0x2c   : > { %204 = vst.msk [vmem:[#allocation2 + $0x18] sm:$0xff] %vm197_vm0, %v1872_v16  ;;  %203 = vst.msk [vmem:[#allocation2 + $0x10] sm:$0xff] %vm197_vm0, %v1871_v19  ;;  %v2334_v25 = vld [vmem:[#allocation3 + $0xf0] sm:$0xff]   ;;  %2061 = vmatpush3.bf16.msra.mxu1 %v2333_v23  ;;  %v2330_v27 = vld [vmem:[#allocation3 + $0x40] sm:$0xff]   ;;  %vm274_vm3 = vcmp.ge.s32.totalorder %v2628_v24, 1  ;;  %vm814_vm10 = vcmp.ge.s32.totalorder %v2628_v24, 2 }
  0x2d   : > { %2062 = vmatprep.subr.bf16.mxu1 %v2334_v25  ;;  %v2336_v28 = vld [vmem:[#allocation3 + $0xb0] sm:$0xff]   ;;  %v2331_v32 = vld [vmem:[#allocation3] sm:$0xff]   ;;  %vm2636_vm5 = vmpackc.low %vm2524_vm4, %vm272_vm1  ;;  %vm1237_vm15 = vcmp.ge.s32.totalorder %v2628_v24, 4  ;;  %s1867_s19 = sshll.u32 %s179_s17, 5  ;;  %vm1766_vm1 = vcmask 130048   ;;  %s2031_s24 = sshll.u32 %s2569_s16, 9 }
  0x2e   : > { %2037 = vmatpush3.bf16.msra.mxu0 %v2321_v6  ;;  %v2335_v40 = vld [vmem:[#allocation3 + $0x138] sm:$0xff]   ;;  %vm2647_vm6 = vmpackc.low %vm2524_vm4, %vm274_vm3  ;;  %v2337_v49 = vld [vmem:[#allocation3 + $0xe8] sm:$0xff]   ;;  %s181_s20 = scalar_lea.vmem [#allocation6], %s1867_s19  ;;  %s2796_s28 = scalar_lea.hbm %s2846_s3, %s2031_s24 }
  0x2f   : > { %2038 = vmatprep.subr.bf16.mxu0 %v2322_v7  ;;  %v2338_v50 = vld [vmem:[#allocation3 + $0x130] sm:$0xff]   ;;  %v2339_v51 = vld [vmem:[#allocation3 + $0xa8] sm:$0xff]   ;;  %v2340_v52 = vld [vmem:[#allocation3 + $0xe0] sm:$0xff]   ;;  %s1787_s25 = sshll.u32 %s181_s20, 4  ;;  %s2803_s29 = scalar_lea.sflag [#allocation5], %s179_s17  ;;  %s2798_s25 = int_to_ptr.vmem [resolvable:$true] %s1787_s25 }
  0x30   : > { %2063 = vmatpush3.bf16.msra.mxu1 %v2336_v28  ;;  %v2341_v53 = vld [vmem:[#allocation3 + $0x128] sm:$0xff]   ;;  %v2342_v54 = vld [vmem:[#allocation3 + $0xa0] sm:$0xff]   ;;  %v2343_v55 = vld [vmem:[#allocation3 + $0xd8] sm:$0xff]   ;;  %s2454_s16 = scalar_lea.vmem %s2798_s25, 512  ;;  %s2525_s30 = smov [#allocation6]  }
  0x31   : > { %2064 = vmatprep.subr.bf16.mxu1 %v2337_v49  ;;  %v2344_v56 = vld [vmem:[#allocation3 + $0x120] sm:$0xff]   ;;  %v2345_v57 = vld [vmem:[#allocation3 + $0x98] sm:$0xff]   ;;  %v2346_v58 = vld [vmem:[#allocation3 + $0xd0] sm:$0xff]   ;;  %p2455_p8 = scmp.ne.s32.totalorder %s2798_s25, %s2454_s16  ;;  %s2458_s4 = sshll.u32 %s2525_s30, 4  ;;  %s2459_s4 = int_to_ptr.vmem [resolvable:$false] %s2458_s4 }
  0x32   : > { %2039 = vmatpush3.bf16.msra.mxu0 %v2323_v9  ;;  %v205_v29 = vld [vmem:[#allocation2] sm:$0xff]  ;;  %v206_v30 = vld [vmem:[#allocation2 + $0x8] sm:$0xff]  ;;  %v2347_v59 = vld [vmem:[#allocation3 + $0x118] sm:$0xff]   ;;  %s2460_s5 = scalar_lea.vmem %s2459_s4, 1024  ;;  %p2461_p11 = scmp.lt.s32.totalorder %s2798_s25, %s2459_s4 }
  0x33   : > { %2040 = vmatprep.subr.bf16.mxu0 %v2324_v10  ;;  %v208_v31 = vld [vmem:[#allocation2 + $0x18] sm:$0xff]  ;;  %v263_v33 = vrot.slane %v205_v29, 7  ;;  %v264_v34 = vrot.slane %v206_v30, 7  ;;  %v290_v36 = vpack.c.bf16 %v206_v30, %v205_v29  ;;  %v207_v38 = vld [vmem:[#allocation2 + $0x10] sm:$0xff]  ;;  %v2349_v61 = vld [vmem:[#allocation3 + $0xc8] sm:$0xff]   ;;  %p2456_p9 = pnand %p2455_p8, %p2586_p5  ;;  %p2462_p12 = scmp.lt.s32.totalorder %s2460_s5, %s2454_s16 }
  0x34   : > { %v266_v35 = vrot.slane %v208_v31, 7  ;;  %v265_v39 = vrot.slane %v207_v38, 7  ;;  %v291_v44 = vpack.c.bf16 %v208_v31, %v207_v38  ;;  %2065 = vmatpush3.bf16.msra.mxu1 %v2339_v51  ;;  %v2348_v60 = vld [vmem:[#allocation3 + $0x90] sm:$0xff]   ;;  %v2351_v63 = vld [vmem:[#allocation3 + $0x88] sm:$0xff]   ;;  %v2352_v0 = vld [vmem:[#allocation3 + $0xc0] sm:$0xff]  }
  0x35   : > { %v270_v41 = vsel %vm267_vm2, %v263_v33, %v264_v34  ;;  %456 = vmatprep.mubr.bf16.mxu0 %v290_v36  ;;  %2066 = vmatprep.subr.bf16.mxu1 %v2340_v52  ;;  %v2350_v62 = vld [vmem:[#allocation3 + $0x110] sm:$0xff]   ;;  %v2353_v1 = vld [vmem:[#allocation3 + $0x108] sm:$0xff]   ;;  %v2354_v2 = vld [vmem:[#allocation3 + $0x80] sm:$0xff]   ;;  %p2457_p10 = pneg %p2456_p9  ;;  %p2463_p13 = por %p2462_p12, %p2461_p11 }
  0x36   : > { %2041 = vmatpush3.bf16.msra.mxu0 %v2325_v11  ;;  %v271_v42 = vsel %vm267_vm2, %v266_v35, %v263_v33  ;;  %v268_v46 = vsel %vm267_vm2, %v265_v39, %v266_v35  ;;  %v269_v47 = vsel %vm267_vm2, %v264_v34, %v265_v39  ;;  %v2355_v3 = vld [vmem:[#allocation3 + $0x100] sm:$0xff]   ;;  %v2356_v4 = vld [vmem:[#allocation3 + $0x1b8] sm:$0xff]   ;;  %v2361_v37 = vld [vmem:[#allocation3 + $0x168] sm:$0xff]  }
  0x37   : > { %2042 = vmatprep.subr.bf16.mxu0 %v2326_v13  ;;  %v1890_v43 = vpack.c.bf16 %v270_v41, %v271_v42  ;;  %v1893_v48 = vpack.c.bf16 %v268_v46, %v269_v47  ;;  %v2663_v7 = vld [vmem:[%s2845_s2] sm:$0xff]  ;;  %v2357_v38 = vld [vmem:[#allocation3 + $0x178] sm:$0xff]   ;;  %v2358_v46 = vld [vmem:[#allocation3 + $0x1b0] sm:$0xff]   ;;  %p2464_p0 = pnand %p2463_p13, %p2457_p10 }
  0x38   : > { %2067 = vmatpush3.bf16.msra.mxu1 %v2342_v54  ;;  %v327_v10 = vrot.slane %v2663_v7, %v326_v5  ;;  %v2359_v47 = vld [vmem:[#allocation3 + $0x170] sm:$0xff]   ;;  %v2362_v49 = vld [vmem:[#allocation3 + $0x1a0] sm:$0xff]   ;;  %v2364_v51 = vld [vmem:[#allocation3 + $0x198] sm:$0xff]  }
  0x39   : > { %2068 = vmatprep.subr.bf16.mxu1 %v2343_v55  ;;  %v2365_v52 = vld [vmem:[#allocation3 + $0x158] sm:$0xff]   ;;  %v2367_v54 = vld [vmem:[#allocation3 + $0x150] sm:$0xff]   ;;  %v2368_v45 = vld [vmem:[#allocation3 + $0x188] sm:$0xff]  }
  0x3a   : > { %2043 = vmatpush3.bf16.msra.mxu0 %v2327_v18  ;;  %v2369_v55 = vld [vmem:[#allocation3 + $0x148] sm:$0xff]   ;;  %vm2702_vm9 = vmpackc.low %vm2524_vm4, %vm812_vm8  ;;  %v2408_v24 = vld [vmem:[#allocation3 + $0x358] sm:$0xff]  }
  0x3b   : > { %2044 = vmatprep.subr.bf16.mxu0 %v2328_v20  ;;  %vm2717_vm11 = vmpackc.low %vm2524_vm4, %vm814_vm10 }
  0x3c   : > { %2069 = vmatpush3.bf16.msra.mxu1 %v2345_v57  ;;  %v2371_v57 = vld [vmem:[#allocation3 + $0x140] sm:$0xff]   ;;  %vm2750_vm14 = vmpackc.low %vm2524_vm4, %vm1235_vm13 }
  0x3d   : > { %2070 = vmatprep.subr.bf16.mxu1 %v2346_v58  ;;  %v2372_v58 = vld [vmem:[#allocation3 + $0x238] sm:$0xff]   ;;  %vm2762_vm0 = vmpackc.low %vm2524_vm4, %vm1237_vm15 }
  0x3e   : > { %2045 = vmatpush3.bf16.msra.mxu0 %v2329_v26 }
  0x3f   : > { %2046 = vmatprep.subr.bf16.mxu0 %v2330_v27 }
  0x40   : > { %2071 = vmatpush3.bf16.msra.mxu1 %v2348_v60  ;;  %v2374_v60 = vld [vmem:[#allocation3 + $0x230] sm:$0xff]  }
  0x41   : > { %2072 = vmatprep.subr.bf16.mxu1 %v2349_v61  ;;  %v2375_v61 = vld [vmem:[#allocation3 + $0x1f0] sm:$0xff]  }
  0x42   : > { %2047 = vmatpush3.bf16.msra.mxu0 %v2331_v32 }
  0x43   : > { %2220 = vmatprep.subr.bf16.mxu0 %v2335_v40 }
  0x44   : > { %2073 = vmatpush3.bf16.msra.mxu1 %v2351_v63  ;;  %v527_v63 = vsub.s32 1, %v2618_v12 }
  0x45   : > { %1891 = vmatmul.mubr.msk.bf16.vlgmr.msra.gmra.mxu0 %vm2636_vm5, %v1890_v43  ;;  %2074 = vmatprep.subr.bf16.mxu1 %v2352_v0 }
  0x46   : > { %464 = vmatprep.mubr.bf16.mxu0 %v291_v44  ;;  %2221 = vmatpush3.bf16.msra.mxu0 %v2335_v40 }
  0x47   : > { %2222 = vmatprep.subr.bf16.mxu0 %v2338_v50 }
  0x48   : > { %2075 = vmatpush3.bf16.msra.mxu1 %v2354_v2 }
  0x49   : > { %2098 = vmatprep.subr.bf16.mxu1 %v2356_v4 }
  0x4a   : > { %2223 = vmatpush3.bf16.msra.mxu0 %v2338_v50  ;;  %v2363_v50 = vld [vmem:[#allocation3 + $0x160] sm:$0xff]  }
  0x4b   : > { %2224 = vmatprep.subr.bf16.mxu0 %v2341_v53 }
  0x4d   : > { %1894 = vmatmul.mubr.msk.bf16.gmra.mxu0 %vm2647_vm6, %v1893_v48  ;;  %v2360_v48 = vld [vmem:[#allocation3 + $0x1a8] sm:$0xff]  }
  0x4e   : > { %2236 = vmatprep.mubr.bf16.mxu0 %v290_v36  ;;  %2225 = vmatpush3.bf16.msra.mxu0 %v2341_v53  ;;  %v2366_v53 = vld [vmem:[#allocation3 + $0x190] sm:$0xff]  }
  0x4f   : > { %2226 = vmatprep.subr.bf16.mxu0 %v2344_v56 }
  0x52   : > { %2227 = vmatpush3.bf16.msra.mxu0 %v2344_v56  ;;  %v2370_v56 = vld [vmem:[#allocation3 + $0x180] sm:$0xff]  }
  0x53   : > { %2228 = vmatprep.subr.bf16.mxu0 %v2347_v59 }
  0x56   : > { %2229 = vmatpush3.bf16.msra.mxu0 %v2347_v59  ;;  %v2373_v59 = vld [vmem:[#allocation3 + $0x1f8] sm:$0xff]  }
  0x57   : > { %2230 = vmatprep.subr.bf16.mxu0 %v2350_v62 }
  0x5a   : > { %2231 = vmatpush3.bf16.msra.mxu0 %v2350_v62 }
  0x5b   : > { %2232 = vmatprep.subr.bf16.mxu0 %v2353_v1 }
  0x5e   : > { %2233 = vmatpush3.bf16.msra.mxu0 %v2353_v1  ;;  %v696_v1 = vsub.s32 2, %v2618_v12 }
  0x5f   : > { %2234 = vmatprep.subr.bf16.mxu0 %v2355_v3 }
  0x62   : > { %2235 = vmatpush3.bf16.msra.mxu0 %v2355_v3  ;;  %v528_v3 = vrot.slane %v2663_v7, %v527_v63  ;;  %v2383_v63 = vld [vmem:[#allocation3 + $0x1d0] sm:$0xff]  }
  0x63   : > { %2126 = vmatprep.subr.bf16.mxu0 %v2372_v58  ;;  %v2378_v58 = vld [vmem:[#allocation3 + $0x220] sm:$0xff]  }
  0x65   : > { %2237 = vmatmul.mubr.bf16.vlgmr.msra.gmra.mxu0 %v291_v44 }
  0x66   : > { %2127 = vmatpush3.bf16.msra.mxu0 %v2373_v59  ;;  %v2379_v59 = vld [vmem:[#allocation3 + $0x1e0] sm:$0xff]  }
  0x67   : > { %2128 = vmatprep.subr.bf16.mxu0 %v2374_v60  ;;  %v2380_v60 = vld [vmem:[#allocation3 + $0x218] sm:$0xff]  }
  0x6a   : > { %2129 = vmatpush3.bf16.msra.mxu0 %v2375_v61  ;;  %v2381_v61 = vld [vmem:[#allocation3 + $0x1d8] sm:$0xff]  }
 0x105   : > { %v2048_v6 = vpop.f32.mrf.mxu0 }
 0x107   : > { %v2049_v8 = vpop.f32.mrf.mxu0 }
 0x108   : > { %v2050_v9 = vadd.f32 %v2049_v8, %v2048_v6  ;;  %v697_v8 = vrot.slane %v2663_v7, %v696_v1  ;;  %v2385_v1 = vld [vmem:[#allocation3 + $0x1c8] sm:$0xff]  }
 0x109   : > { %v2051_v11 = vpop.f32.mrf.mxu0 }
 0x10a   : > { %v459_v15 = vadd.f32 %v2050_v9, %v327_v10 }
 0x10b   : > { %v2052_v13 = vpop.f32.mrf.mxu0 }
 0x10c   : > { %v2053_v14 = vadd.f32 %v2052_v13, %v2051_v11  ;;  %v473_v19 = vmax.f32 %v459_v15, 0.0 }
 0x10d   : > { %v2054_v16 = vpop.f32.mrf.mxu0 }
 0x10e   : > { %v462_v17 = vadd.f32 %v2053_v14, %v327_v10  ;;  %v477_v33 = vrot.slane %v473_v19, 7 }
 0x10f   : > { %v2055_v18 = vpop.f32.mrf.mxu0 }
 0x110   : > { %v474_v20 = vmax.f32 %v462_v17, 0.0  ;;  %v2056_v26 = vadd.f32 %v2055_v18, %v2054_v16 }
 0x111   : > { %v2057_v22 = vpop.f32.mrf.mxu0 }
 0x112   : > { %v491_v23 = vpack.c.bf16 %v474_v20, %v473_v19  ;;  %v467_v29 = vadd.f32 %v2056_v26, %v327_v10  ;;  %v478_v31 = vrot.slane %v474_v20, 7 }
 0x113   : > { %v2058_v25 = vpop.f32.mrf.mxu0 }
 0x114   : > { %v2059_v27 = vadd.f32 %v2058_v25, %v2057_v22  ;;  %657 = vmatprep.mubr.bf16.mxu1 %v491_v23  ;;  %v475_v34 = vmax.f32 %v467_v29, 0.0  ;;  %v483_v35 = vsel %vm267_vm2, %v477_v33, %v478_v31 }
 0x116   : > { %v470_v28 = vadd.f32 %v2059_v27, %v327_v10  ;;  %v479_v41 = vrot.slane %v475_v34, 7 }
 0x118   : > { %v476_v30 = vmax.f32 %v470_v28, 0.0  ;;  %v482_v43 = vsel %vm267_vm2, %v478_v31, %v479_v41 }
 0x11a   : > { %v480_v32 = vrot.slane %v476_v30, 7  ;;  %v492_v40 = vpack.c.bf16 %v476_v30, %v475_v34 }
 0x11c   : > { %v484_v36 = vsel %vm267_vm2, %v480_v32, %v477_v33  ;;  %v481_v42 = vsel %vm267_vm2, %v479_v41, %v480_v32 }
 0x11d   : > { %v1912_v39 = vpack.c.bf16 %v483_v35, %v484_v36  ;;  %v1915_v44 = vpack.c.bf16 %v481_v42, %v482_v43 }
 0x11f   : > { %1913 = vmatmul.mubr.msk.bf16.vlgmr.msra.gmra.mxu1 %vm2636_vm5, %v1912_v39 }
 0x120   : > { %665 = vmatprep.mubr.bf16.mxu1 %v492_v40  ;;  %2099 = vmatpush3.bf16.msra.mxu1 %v2357_v38 }
 0x121   : > { %2100 = vmatprep.subr.bf16.mxu1 %v2358_v46 }
 0x124   : > { %2101 = vmatpush3.bf16.msra.mxu1 %v2359_v47 }
 0x125   : > { %2102 = vmatprep.subr.bf16.mxu1 %v2360_v48  ;;  %v2238_v62 = vpop.f32.mrf.mxu0 }
 0x126   : > { %v789_v39 = vadd.f32 %v2238_v62, %v697_v8  ;;  %v2382_v62 = vld [vmem:[#allocation3 + $0x210] sm:$0xff]  }
 0x127   : > { %1916 = vmatmul.mubr.msk.bf16.gmra.mxu1 %vm2647_vm6, %v1915_v44  ;;  %v780_v0 = vpop.f32.mrf.mxu0 }
 0x128   : > { %2103 = vmatpush3.bf16.msra.mxu1 %v2361_v37  ;;  %v781_v16 = vadd.f32 %v780_v0, %v697_v8  ;;  %v2384_v0 = vld [vmem:[#allocation3 + $0x208] sm:$0xff]  }
 0x129   : > { %2104 = vmatprep.subr.bf16.mxu1 %v2362_v49  ;;  %v2239_v5 = vpop.f32.mrf.mxu0  ;;  %v2394_v49 = vld [vmem:[#allocation3 + $0x2a0] sm:$0xff]  }
 0x12a   : > { %v792_v35 = vadd.f32 %v2239_v5, %v697_v8  ;;  %v2389_v5 = vld [vmem:[#allocation3 + $0x278] sm:$0xff]  }
 0x12b   : > { %v783_v13 = vpop.f32.mrf.mxu0 }
 0x12c   : > { %2105 = vmatpush3.bf16.msra.mxu1 %v2363_v50  ;;  %v784_v19 = vadd.f32 %v783_v13, %v697_v8 }
 0x12d   : > { %2106 = vmatprep.subr.bf16.mxu1 %v2364_v51 }
 0x130   : > { %2107 = vmatpush3.bf16.msra.mxu1 %v2365_v52 }
 0x131   : > { %2108 = vmatprep.subr.bf16.mxu1 %v2366_v53 }
 0x134   : > { %2109 = vmatpush3.bf16.msra.mxu1 %v2367_v54 }
 0x135   : > { %2110 = vmatprep.subr.bf16.mxu1 %v2368_v45  ;;  %v2400_v45 = vld [vmem:[#allocation3 + $0x288] sm:$0xff]  }
 0x138   : > { %2111 = vmatpush3.bf16.msra.mxu1 %v2369_v55 }
 0x139   : > { %2112 = vmatprep.subr.bf16.mxu1 %v2370_v56  ;;  %v2376_v56 = vld [vmem:[#allocation3 + $0x228] sm:$0xff]  }
 0x13a   : > { %2130 = vmatprep.subr.bf16.mxu0 %v2376_v56  ;;  %v2397_v56 = vld [vmem:[#allocation3 + $0x258] sm:$0xff]  }
 0x13c   : > { %2113 = vmatpush3.bf16.msra.mxu1 %v2371_v57  ;;  %v2377_v57 = vld [vmem:[#allocation3 + $0x1e8] sm:$0xff]  }
 0x13d   : > { %2131 = vmatpush3.bf16.msra.mxu0 %v2377_v57  ;;  %v2398_v57 = vld [vmem:[#allocation3 + $0x290] sm:$0xff]  }
 0x13e   : > { %2132 = vmatprep.subr.bf16.mxu0 %v2378_v58  ;;  %v2399_v58 = vld [vmem:[#allocation3 + $0x250] sm:$0xff]  }
 0x141   : > { %2133 = vmatpush3.bf16.msra.mxu0 %v2379_v59  ;;  %v2401_v59 = vld [vmem:[#allocation3 + $0x248] sm:$0xff]  }
 0x142   : > { %2134 = vmatprep.subr.bf16.mxu0 %v2380_v60  ;;  %v2402_v60 = vld [vmem:[#allocation3 + $0x280] sm:$0xff]  }
 0x145   : > { %2135 = vmatpush3.bf16.msra.mxu0 %v2381_v61  ;;  %v2403_v61 = vld [vmem:[#allocation3 + $0x240] sm:$0xff]  }
 0x146   : > { %2136 = vmatprep.subr.bf16.mxu0 %v2382_v62  ;;  %v2404_v62 = vld [vmem:[#allocation3 + $0x378] sm:$0xff]  }
 0x149   : > { %2137 = vmatpush3.bf16.msra.mxu0 %v2383_v63  ;;  %v2412_v63 = vld [vmem:[#allocation3 + $0x338] sm:$0xff]  }
 0x14a   : > { %2138 = vmatprep.subr.bf16.mxu0 %v2384_v0  ;;  %v2413_v0 = vld [vmem:[#allocation3 + $0x2f8] sm:$0xff]  }
 0x14d   : > { %2139 = vmatpush3.bf16.msra.mxu0 %v2385_v1  ;;  %v2414_v1 = vld [vmem:[#allocation3 + $0x330] sm:$0xff]  }
 0x1df   : > { %v2076_v2 = vpop.f32.mrf.mxu1 }
 0x1e1   : > { %v2077_v4 = vpop.f32.mrf.mxu1 }
 0x1e2   : > { %v2078_v6 = vadd.f32 %v2077_v4, %v2076_v2  ;;  %v2386_v2 = vld [vmem:[#allocation3 + $0x200] sm:$0xff]   ;;  %v2388_v4 = vld [vmem:[#allocation3 + $0x2b8] sm:$0xff]  }
 0x1e3   : > { %v2079_v9 = vpop.f32.mrf.mxu1  ;;  %2140 = vmatprep.subr.bf16.mxu0 %v2386_v2  ;;  %2154 = vmatprep.subr.bf16.mxu1 %v2388_v4  ;;  %v2415_v2 = vld [vmem:[#allocation3 + $0x2f0] sm:$0xff]  }
 0x1e4   : > { %v660_v10 = vadd.f32 %v2078_v6, %v528_v3  ;;  %v866_v6 = vsub.s32 3, %v2618_v12 }
 0x1e5   : > { %v2080_v11 = vpop.f32.mrf.mxu1 }
 0x1e6   : > { %v674_v14 = vmax.f32 %v660_v10, 0.0  ;;  %v2081_v15 = vadd.f32 %v2080_v11, %v2079_v9  ;;  %v867_v10 = vrot.slane %v2663_v7, %v866_v6 }
 0x1e7   : > { %v2082_v17 = vpop.f32.mrf.mxu1 }
 0x1e8   : > { %v663_v18 = vadd.f32 %v2081_v15, %v528_v3  ;;  %v795_v23 = vadd.f32 %v781_v16, %v674_v14 }
 0x1e9   : > { %v2083_v20 = vpop.f32.mrf.mxu1 }
 0x1ea   : > { %v675_v22 = vmax.f32 %v663_v18, 0.0  ;;  %v2084_v25 = vadd.f32 %v2083_v20, %v2082_v17  ;;  %v2682_v29 = vmax.f32 %v795_v23, 0.0 }
 0x1eb   : > { %v2085_v26 = vpop.f32.mrf.mxu1 }
 0x1ec   : > { %v796_v27 = vadd.f32 %v784_v19, %v675_v22  ;;  %v668_v30 = vadd.f32 %v2084_v25, %v528_v3  ;;  %v803_v44 = vrot.slane %v2682_v29, 6 }
 0x1ed   : > { %v2086_v28 = vpop.f32.mrf.mxu1 }
 0x1ee   : > { %v2684_v31 = vmax.f32 %v796_v27, 0.0  ;;  %v2087_v32 = vadd.f32 %v2086_v28, %v2085_v26  ;;  %v676_v36 = vmax.f32 %v668_v30, 0.0 }
 0x1f0   : > { %v671_v33 = vadd.f32 %v2087_v32, %v528_v3  ;;  %v830_v34 = vpack.c.bf16 %v2684_v31, %v2682_v29  ;;  %v797_v41 = vadd.f32 %v789_v39, %v676_v36  ;;  %v804_v42 = vrot.slane %v2684_v31, 6  ;;  %v2387_v3 = vld [vmem:[#allocation3 + $0x1c0] sm:$0xff]  }
 0x1f1   : > { %2141 = vmatpush3.bf16.msra.mxu0 %v2387_v3  ;;  %v1067_v3 = vsub.s32 4, %v2618_v12 }
 0x1f2   : > { %v677_v38 = vmax.f32 %v671_v33, 0.0  ;;  %996 = vmatprep.mubr.bf16.mxu1 %v830_v34  ;;  %v2695_v47 = vmax.f32 %v797_v41, 0.0  ;;  %v810_v48 = vsel %vm807_vm7, %v803_v44, %v804_v42  ;;  %2182 = vmatprep.subr.bf16.mxu0 %v2412_v63  ;;  %v2423_v63 = vld [vmem:[#allocation3 + $0x2d0] sm:$0xff]  }
 0x1f4   : > { %v798_v40 = vadd.f32 %v792_v35, %v677_v38  ;;  %v805_v52 = vrot.slane %v2695_v47, 6 }
 0x1f6   : > { %v2689_v43 = vmax.f32 %v798_v40, 0.0  ;;  %v809_v54 = vsel %vm807_vm7, %v804_v42, %v805_v52 }
 0x1f8   : > { %v806_v46 = vrot.slane %v2689_v43, 6  ;;  %v831_v51 = vpack.c.bf16 %v2689_v43, %v2695_v47 }
 0x1fa   : > { %v811_v37 = vsel %vm807_vm7, %v806_v46, %v803_v44  ;;  %v808_v53 = vsel %vm807_vm7, %v805_v52, %v806_v46  ;;  %v2392_v52 = vld [vmem:[#allocation3 + $0x2a8] sm:$0xff]  }
 0x1fb   : > { %v1942_v50 = vpack.c.bf16 %v810_v48, %v811_v37  ;;  %v1945_v55 = vpack.c.bf16 %v808_v53, %v809_v54  ;;  %v2393_v53 = vld [vmem:[#allocation3 + $0x268] sm:$0xff]   ;;  %v2395_v54 = vld [vmem:[#allocation3 + $0x260] sm:$0xff]  }
 0x1fd   : > { %1943 = vmatmul.mubr.msk.bf16.vlgmr.msra.gmra.mxu1 %vm2702_vm9, %v1942_v50  ;;  %v2390_v50 = vld [vmem:[#allocation3 + $0x2b0] sm:$0xff]  }
 0x1fe   : > { %1004 = vmatprep.mubr.bf16.mxu1 %v831_v51  ;;  %2155 = vmatpush3.bf16.msra.mxu1 %v2389_v5  ;;  %v2391_v51 = vld [vmem:[#allocation3 + $0x270] sm:$0xff]   ;;  %v1068_v5 = vrot.slane %v2663_v7, %v1067_v3  ;;  %v2427_v3 = vld [vmem:[#allocation3 + $0x2c0] sm:$0xff]  }
 0x1ff   : > { %2156 = vmatprep.subr.bf16.mxu1 %v2390_v50 }
 0x202   : > { %2157 = vmatpush3.bf16.msra.mxu1 %v2391_v51 }
 0x203   : > { %2158 = vmatprep.subr.bf16.mxu1 %v2392_v52 }
 0x205   : > { %1946 = vmatmul.mubr.msk.bf16.gmra.mxu1 %vm2717_vm11, %v1945_v55  ;;  %v2396_v55 = vld [vmem:[#allocation3 + $0x298] sm:$0xff]  }
 0x206   : > { %2159 = vmatpush3.bf16.msra.mxu1 %v2393_v53 }
 0x207   : > { %2160 = vmatprep.subr.bf16.mxu1 %v2394_v49  ;;  %v2407_v49 = vld [vmem:[#allocation3 + $0x360] sm:$0xff]  }
 0x20a   : > { %2161 = vmatpush3.bf16.msra.mxu1 %v2395_v54  ;;  %v2409_v54 = vld [vmem:[#allocation3 + $0x350] sm:$0xff]  }
 0x20b   : > { %2162 = vmatprep.subr.bf16.mxu1 %v2396_v55  ;;  %v2410_v55 = vld [vmem:[#allocation3 + $0x348] sm:$0xff]  }
 0x20e   : > { %2163 = vmatpush3.bf16.msra.mxu1 %v2397_v56  ;;  %v2411_v56 = vld [vmem:[#allocation3 + $0x340] sm:$0xff]  }
 0x20f   : > { %2164 = vmatprep.subr.bf16.mxu1 %v2398_v57  ;;  %v2416_v57 = vld [vmem:[#allocation3 + $0x328] sm:$0xff]  }
 0x212   : > { %2165 = vmatpush3.bf16.msra.mxu1 %v2399_v58  ;;  %v2417_v58 = vld [vmem:[#allocation3 + $0x2e8] sm:$0xff]  }
 0x213   : > { %2166 = vmatprep.subr.bf16.mxu1 %v2400_v45  ;;  %v2418_v45 = vld [vmem:[#allocation3 + $0x320] sm:$0xff]  }
 0x216   : > { %2167 = vmatpush3.bf16.msra.mxu1 %v2401_v59  ;;  %v2419_v59 = vld [vmem:[#allocation3 + $0x2e0] sm:$0xff]  }
 0x217   : > { %2168 = vmatprep.subr.bf16.mxu1 %v2402_v60  ;;  %v2420_v60 = vld [vmem:[#allocation3 + $0x318] sm:$0xff]  }
 0x21a   : > { %2169 = vmatpush3.bf16.msra.mxu1 %v2403_v61  ;;  %v2421_v61 = vld [vmem:[#allocation3 + $0x2d8] sm:$0xff]  }
 0x21b   : > { %2240 = vmatprep.subr.bf16.mxu1 %v2404_v62 }
 0x2bd   : > { %v2114_v8 = vpop.f32.mrf.mxu1 }
 0x2bf   : > { %v2115_v9 = vpop.f32.mrf.mxu1 }
 0x2c0   : > { %v2116_v11 = vadd.f32 %v2115_v9, %v2114_v8 }
 0x2c1   : > { %v2117_v13 = vpop.f32.mrf.mxu1 }
 0x2c2   : > { %v999_v15 = vadd.f32 %v2116_v11, %v867_v10 }
 0x2c3   : > { %v2118_v14 = vpop.f32.mrf.mxu1 }
 0x2c4   : > { %v2119_v16 = vadd.f32 %v2118_v14, %v2117_v13  ;;  %v1013_v20 = vmax.f32 %v999_v15, 0.0 }
 0x2c5   : > { %v2120_v17 = vpop.f32.mrf.mxu1 }
 0x2c6   : > { %v1002_v18 = vadd.f32 %v2119_v16, %v867_v10  ;;  %v1017_v35 = vrot.slane %v1013_v20, 6 }
 0x2c7   : > { %v2121_v19 = vpop.f32.mrf.mxu1 }
 0x2c8   : > { %v1014_v22 = vmax.f32 %v1002_v18, 0.0  ;;  %v2122_v27 = vadd.f32 %v2121_v19, %v2120_v17 }
 0x2c9   : > { %v2123_v23 = vpop.f32.mrf.mxu1 }
 0x2ca   : > { %v1031_v25 = vpack.c.bf16 %v1014_v22, %v1013_v20  ;;  %v1018_v32 = vrot.slane %v1014_v22, 6  ;;  %v1007_v33 = vadd.f32 %v2122_v27, %v867_v10 }
 0x2cb   : > { %v2124_v26 = vpop.f32.mrf.mxu1 }
 0x2cc   : > { %v2125_v28 = vadd.f32 %v2124_v26, %v2123_v23  ;;  %1197 = vmatprep.mubr.bf16.mxu0 %v1031_v25  ;;  %v1023_v38 = vsel %vm807_vm7, %v1017_v35, %v1018_v32  ;;  %v1015_v39 = vmax.f32 %v1007_v33, 0.0 }
 0x2ce   : > { %v1010_v30 = vadd.f32 %v2125_v28, %v867_v10  ;;  %v1019_v44 = vrot.slane %v1015_v39, 6 }
 0x2d0   : > { %v1016_v34 = vmax.f32 %v1010_v30, 0.0  ;;  %v1022_v48 = vsel %vm807_vm7, %v1018_v32, %v1019_v44 }
 0x2d2   : > { %v1020_v36 = vrot.slane %v1016_v34, 6  ;;  %v1032_v42 = vpack.c.bf16 %v1016_v34, %v1015_v39 }
 0x2d4   : > { %v1024_v40 = vsel %vm807_vm7, %v1020_v36, %v1017_v35  ;;  %v1021_v46 = vsel %vm807_vm7, %v1019_v44, %v1020_v36 }
 0x2d5   : > { %v1964_v41 = vpack.c.bf16 %v1023_v38, %v1024_v40  ;;  %v1967_v37 = vpack.c.bf16 %v1021_v46, %v1022_v48  ;;  %v2405_v46 = vld [vmem:[#allocation3 + $0x370] sm:$0xff]  }
 0x2d7   : > { %1965 = vmatmul.mubr.msk.bf16.vlgmr.msra.gmra.mxu0 %vm2702_vm9, %v1964_v41 }
 0x2d8   : > { %1205 = vmatprep.mubr.bf16.mxu0 %v1032_v42  ;;  %2183 = vmatpush3.bf16.msra.mxu0 %v2413_v0  ;;  %v2424_v0 = vld [vmem:[#allocation3 + $0x308] sm:$0xff]  }
 0x2d9   : > { %2184 = vmatprep.subr.bf16.mxu0 %v2414_v1  ;;  %v2425_v1 = vld [vmem:[#allocation3 + $0x2c8] sm:$0xff]  }
 0x2dc   : > { %2185 = vmatpush3.bf16.msra.mxu0 %v2415_v2  ;;  %v2426_v2 = vld [vmem:[#allocation3 + $0x300] sm:$0xff]  }
 0x2dd   : > { %2186 = vmatprep.subr.bf16.mxu0 %v2416_v57 }
 0x2df   : > { %1968 = vmatmul.mubr.msk.bf16.gmra.mxu0 %vm2717_vm11, %v1967_v37  ;;  %v2406_v37 = vld [vmem:[#allocation3 + $0x368] sm:$0xff]  }
 0x2e0   : > { %2187 = vmatpush3.bf16.msra.mxu0 %v2417_v58 }
 0x2e1   : > { %2188 = vmatprep.subr.bf16.mxu0 %v2418_v45 }
 0x2e4   : > { %2189 = vmatpush3.bf16.msra.mxu0 %v2419_v59 }
 0x2e5   : > { %2190 = vmatprep.subr.bf16.mxu0 %v2420_v60 }
 0x2e8   : > { %2191 = vmatpush3.bf16.msra.mxu0 %v2421_v61 }
 0x397   : > { %v2142_v4 = vpop.f32.mrf.mxu0 }
 0x399   : > { %v2143_v6 = vpop.f32.mrf.mxu0 }
 0x39a   : > { %v2144_v8 = vadd.f32 %v2143_v6, %v2142_v4  ;;  %v1289_v4 = vsub.s32 5, %v2618_v12 }
 0x39b   : > { %v2145_v9 = vpop.f32.mrf.mxu0 }
 0x39c   : > { %v1200_v10 = vadd.f32 %v2144_v8, %v1068_v5  ;;  %v1290_v8 = vrot.slane %v2663_v7, %v1289_v4 }
 0x39d   : > { %v2146_v11 = vpop.f32.mrf.mxu0 }
 0x39e   : > { %v1214_v13 = vmax.f32 %v1200_v10, 0.0  ;;  %v2147_v14 = vadd.f32 %v2146_v11, %v2145_v9 }
 0x39f   : > { %v2148_v15 = vpop.f32.mrf.mxu0 }
 0x3a0   : > { %v1203_v16 = vadd.f32 %v2147_v14, %v1068_v5  ;;  %v1218_v18 = vadd.f32 %v1214_v13, %v2682_v29 }
 0x3a1   : > { %v2149_v17 = vpop.f32.mrf.mxu0 }
 0x3a2   : > { %v1215_v19 = vmax.f32 %v1203_v16, 0.0  ;;  %v2150_v20 = vadd.f32 %v2149_v17, %v2148_v15  ;;  %v1222_v26 = vmax.f32 %v1218_v18, 0.0 }
 0x3a3   : > { %v2151_v22 = vpop.f32.mrf.mxu0 }
 0x3a4   : > { %v1219_v23 = vadd.f32 %v1215_v19, %v2684_v31  ;;  %v1208_v28 = vadd.f32 %v2150_v20, %v1068_v5  ;;  %v1226_v31 = vrot.slane %v1222_v26, 4 }
 0x3a5   : > { %v2152_v25 = vpop.f32.mrf.mxu0 }
 0x3a6   : > { %v1223_v27 = vmax.f32 %v1219_v23, 0.0  ;;  %v2153_v30 = vadd.f32 %v2152_v25, %v2151_v22  ;;  %v1216_v34 = vmax.f32 %v1208_v28, 0.0 }
 0x3a8   : > { %v1211_v32 = vadd.f32 %v2153_v30, %v1068_v5  ;;  %v1253_v33 = vpack.c.bf16 %v1223_v27, %v1222_v26  ;;  %v1227_v38 = vrot.slane %v1223_v27, 4  ;;  %v1220_v29 = vadd.f32 %v1216_v34, %v2695_v47 }
 0x3aa   : > { %v1217_v35 = vmax.f32 %v1211_v32, 0.0  ;;  %1419 = vmatprep.mubr.bf16.mxu1 %v1253_v33  ;;  %v1233_v41 = vsel %vm1230_vm12, %v1226_v31, %v1227_v38  ;;  %v1224_v42 = vmax.f32 %v1220_v29, 0.0 }
 0x3ac   : > { %v1221_v36 = vadd.f32 %v1217_v35, %v2689_v43  ;;  %v1228_v21 = vrot.slane %v1224_v42, 4 }
 0x3ae   : > { %v1225_v39 = vmax.f32 %v1221_v36, 0.0  ;;  %v1232_v51 = vsel %vm1230_vm12, %v1227_v38, %v1228_v21 }
 0x3b0   : > { %v1229_v40 = vrot.slane %v1225_v39, 4  ;;  %v1254_v48 = vpack.c.bf16 %v1225_v39, %v1224_v42 }
 0x3b2   : > { %v1234_v44 = vsel %vm1230_vm12, %v1229_v40, %v1226_v31  ;;  %v1231_v50 = vsel %vm1230_vm12, %v1228_v21, %v1229_v40 }
 0x3b3   : > { %v1986_v47 = vpack.c.bf16 %v1233_v41, %v1234_v44  ;;  %v1989_v53 = vpack.c.bf16 %v1231_v50, %v1232_v51 }
 0x3b5   : > { %1987 = vmatmul.mubr.msk.bf16.vlgmr.msra.gmra.mxu1 %vm2750_vm14, %v1986_v47  ;;  %v1490_v47 = vsub.s32 6, %v2618_v12 }
 0x3b6   : > { %2241 = vmatpush3.bf16.msra.mxu1 %v2404_v62  ;;  %1427 = vmatprep.mubr.bf16.mxu1 %v1254_v48  ;;  %v2422_v62 = vld [vmem:[#allocation3 + $0x310] sm:$0xff]  }
 0x3b7   : > { %2242 = vmatprep.subr.bf16.mxu1 %v2405_v46  ;;  %2192 = vmatprep.subr.bf16.mxu0 %v2422_v62  ;;  %v1491_v21 = vrot.slane %v2663_v7, %v1490_v47 }
 0x3b8   : > { %2193 = vmatpush3.bf16.msra.mxu0 %v2423_v63 }
 0x3b9   : > { %2194 = vmatprep.subr.bf16.mxu0 %v2424_v0 }
 0x3ba   : > { %2243 = vmatpush3.bf16.msra.mxu1 %v2405_v46 }
 0x3bb   : > { %2244 = vmatprep.subr.bf16.mxu1 %v2406_v37 }
 0x3bc   : > { %2195 = vmatpush3.bf16.msra.mxu0 %v2425_v1 }
 0x3bd   : > { %1990 = vmatmul.mubr.msk.bf16.gmra.mxu1 %vm2762_vm0, %v1989_v53  ;;  %2196 = vmatprep.subr.bf16.mxu0 %v2426_v2 }
 0x3be   : > { %2245 = vmatpush3.bf16.msra.mxu1 %v2406_v37  ;;  %2256 = vmatprep.mubr.bf16.mxu1 %v1253_v33 }
 0x3bf   : > { %2246 = vmatprep.subr.bf16.mxu1 %v2407_v49 }
 0x3c0   : > { %2197 = vmatpush3.bf16.msra.mxu0 %v2427_v3 }
 0x3c2   : > { %2247 = vmatpush3.bf16.msra.mxu1 %v2407_v49 }
 0x3c3   : > { %2248 = vmatprep.subr.bf16.mxu1 %v2408_v24 }
 0x3c6   : > { %2249 = vmatpush3.bf16.msra.mxu1 %v2408_v24 }
 0x3c7   : > { %2250 = vmatprep.subr.bf16.mxu1 %v2409_v54 }
 0x3ca   : > { %2251 = vmatpush3.bf16.msra.mxu1 %v2409_v54 }
 0x3cb   : > { %2252 = vmatprep.subr.bf16.mxu1 %v2410_v55 }
 0x3ce   : > { %2253 = vmatpush3.bf16.msra.mxu1 %v2410_v55 }
 0x3cf   : > { %2254 = vmatprep.subr.bf16.mxu1 %v2411_v56 }
 0x3d2   : > { %2255 = vmatpush3.bf16.msra.mxu1 %v2411_v56 }
 0x3d5   : > { %2257 = vmatmul.mubr.bf16.vlgmr.msra.gmra.mxu1 %v1254_v48  ;;  %v1659_v48 = vsub.s32 7, %v2618_v12 }
 0x3d7   : > { %v1660_v49 = vrot.slane %v2663_v7, %v1659_v48 }
 0x475   : > { %v2170_v5 = vpop.f32.mrf.mxu1 }
 0x477   : > { %v2171_v6 = vpop.f32.mrf.mxu1 }
 0x478   : > { %v2172_v9 = vadd.f32 %v2171_v6, %v2170_v5 }
 0x479   : > { %v2173_v10 = vpop.f32.mrf.mxu1 }
 0x47a   : > { %v1422_v13 = vadd.f32 %v2172_v9, %v1290_v8 }
 0x47b   : > { %v2174_v11 = vpop.f32.mrf.mxu1 }
 0x47c   : > { %v2175_v14 = vadd.f32 %v2174_v11, %v2173_v10  ;;  %v1436_v18 = vmax.f32 %v1422_v13, 0.0 }
 0x47d   : > { %v2176_v15 = vpop.f32.mrf.mxu1 }
 0x47e   : > { %v1425_v16 = vadd.f32 %v2175_v14, %v1290_v8  ;;  %v1440_v33 = vrot.slane %v1436_v18, 4 }
 0x47f   : > { %v2177_v17 = vpop.f32.mrf.mxu1 }
 0x480   : > { %v1437_v19 = vmax.f32 %v1425_v16, 0.0  ;;  %v2178_v25 = vadd.f32 %v2177_v17, %v2176_v15 }
 0x481   : > { %v2179_v20 = vpop.f32.mrf.mxu1 }
 0x482   : > { %v1454_v22 = vpack.c.bf16 %v1437_v19, %v1436_v18  ;;  %v1441_v28 = vrot.slane %v1437_v19, 4  ;;  %v1430_v30 = vadd.f32 %v2178_v25, %v1290_v8 }
 0x483   : > { %v2180_v23 = vpop.f32.mrf.mxu1 }
 0x484   : > { %v2181_v26 = vadd.f32 %v2180_v23, %v2179_v20  ;;  %1620 = vmatprep.mubr.bf16.mxu0 %v1454_v22  ;;  %v1446_v35 = vsel %vm1230_vm12, %v1440_v33, %v1441_v28  ;;  %v1438_v36 = vmax.f32 %v1430_v30, 0.0 }
 0x486   : > { %v1433_v27 = vadd.f32 %v2181_v26, %v1290_v8  ;;  %v1442_v31 = vrot.slane %v1438_v36, 4 }
 0x488   : > { %v1439_v32 = vmax.f32 %v1433_v27, 0.0  ;;  %v1445_v41 = vsel %vm1230_vm12, %v1441_v28, %v1442_v31 }
 0x48a   : > { %v1443_v34 = vrot.slane %v1439_v32, 4  ;;  %v1455_v39 = vpack.c.bf16 %v1439_v32, %v1438_v36 }
 0x48c   : > { %v1447_v38 = vsel %vm1230_vm12, %v1443_v34, %v1440_v33  ;;  %v1444_v40 = vsel %vm1230_vm12, %v1442_v31, %v1443_v34 }
 0x48d   : > { %v2008_v29 = vpack.c.bf16 %v1446_v35, %v1447_v38  ;;  %v2011_v42 = vpack.c.bf16 %v1444_v40, %v1445_v41 }
 0x48f   : > { %2009 = vmatmul.mubr.msk.bf16.vlgmr.msra.gmra.mxu0 %vm2750_vm14, %v2008_v29 }
 0x490   : > { %1628 = vmatprep.mubr.bf16.mxu0 %v1455_v39 }
 0x495   : > { %v2258_v44 = vpop.f32.mrf.mxu1 }
 0x496   : > { %v1752_v3 = vadd.f32 %v2258_v44, %v1660_v49 }
 0x497   : > { %2012 = vmatmul.mubr.msk.bf16.gmra.mxu0 %vm2762_vm0, %v2011_v42  ;;  %v1743_v46 = vpop.f32.mrf.mxu1 }
 0x498   : > { %v1744_v54 = vadd.f32 %v1743_v46, %v1660_v49 }
 0x499   : > { %v2259_v51 = vpop.f32.mrf.mxu1 }
 0x49a   : > { %v1755_v10 = vadd.f32 %v2259_v51, %v1660_v49 }
 0x49b   : > { %v1746_v57 = vpop.f32.mrf.mxu1 }
 0x49c   : > { %v1747_v60 = vadd.f32 %v1746_v57, %v1660_v49 }
 0x54f   : > { %v2198_v43 = vpop.f32.mrf.mxu0 }
 0x551   : > { %v2199_v37 = vpop.f32.mrf.mxu0 }
 0x552   : > { %v2200_v50 = vadd.f32 %v2199_v37, %v2198_v43 }
 0x553   : > { %v2201_v53 = vpop.f32.mrf.mxu0 }
 0x554   : > { %v1623_v24 = vadd.f32 %v2200_v50, %v1491_v21 }
 0x555   : > { %v2202_v52 = vpop.f32.mrf.mxu0 }
 0x556   : > { %v1637_v55 = vmax.f32 %v1623_v24, 0.0  ;;  %v2203_v56 = vadd.f32 %v2202_v52, %v2201_v53 }
 0x557   : > { %v2204_v58 = vpop.f32.mrf.mxu0 }
 0x558   : > { %v1758_v45 = vadd.f32 %v1744_v54, %v1637_v55  ;;  %v1626_v12 = vadd.f32 %v2203_v56, %v1491_v21 }
 0x559   : > { %v2205_v59 = vpop.f32.mrf.mxu0 }
 0x55a   : > { %v1762_v61 = vmax.f32 %v1758_v45, 0.0  ;;  %v1638_v62 = vmax.f32 %v1626_v12, 0.0  ;;  %v2206_v63 = vadd.f32 %v2205_v59, %v2204_v58 }
 0x55b   : > { %v2207_v0 = vpop.f32.mrf.mxu0 }
 0x55c   : > { %1767 = vst.msk [vmem:[%s181_s20] sm:$0xff] %vm1766_vm1, %v1762_v61  ;;  %v1759_v7 = vadd.f32 %v1747_v60, %v1638_v62  ;;  %v1631_v1 = vadd.f32 %v2206_v63, %v1491_v21 }
 0x55d   : > { %v2208_v2 = vpop.f32.mrf.mxu0 }
 0x55e   : > { %v1763_v4 = vmax.f32 %v1759_v7, 0.0  ;;  %v1639_v5 = vmax.f32 %v1631_v1, 0.0  ;;  %v2209_v6 = vadd.f32 %v2208_v2, %v2207_v0 }
 0x560   : > { %1768 = vst.msk [vmem:[%s181_s20 + $0x8] sm:$0xff] %vm1766_vm1, %v1763_v4  ;;  %v1760_v8 = vadd.f32 %v1752_v3, %v1639_v5  ;;  %v1634_v9 = vadd.f32 %v2209_v6, %v1491_v21 }
 0x562   : > { %v1764_v11 = vmax.f32 %v1760_v8, 0.0  ;;  %v1640_v13 = vmax.f32 %v1634_v9, 0.0 }
 0x564   : > { %2021 = vst.msk [vmem:[%s181_s20 + $0x10] sm:$0xff] %vm1766_vm1, %v1764_v11  ;;  %v1761_v14 = vadd.f32 %v1755_v10, %v1640_v13 }
 0x566   : > { %v1765_v15 = vmax.f32 %v1761_v14, 0.0 }
 0x568   : > { %2022 = vst.msk [vmem:[%s181_s20 + $0x18] sm:$0xff] %vm1766_vm1, %v1765_v15 }
 0x569   : > { %2467 = shalt.err (!%p2464_p0)
}
 0x56a   : > { %s2468_s6 = scalar_lea.hbm %s2796_s28, 512  ;;  %s2472_s9 = scalar_lea.hbm %s2846_s3, 1024 }
 0x56b   : > { %p2469_p1 = scmp.ne.s32.totalorder %s2796_s28, %s2468_s6  ;;  %p2473_p4 = scmp.lt.s32.totalorder %s2796_s28, %s2846_s3 }
 0x56c   : > { %p2474_p7 = scmp.lt.s32.totalorder %s2472_s9, %s2468_s6 }
 0x56d   : > { %p2470_p2 = pnand %p2469_p1, %p2586_p5 }
 0x56e   : > { %p2475_p6 = por %p2474_p7, %p2473_p4 }
 0x56f   : > { %p2471_p3 = pneg %p2470_p2 }
 0x571   : > { %p2476_p8 = pnand %p2475_p6, %p2471_p3 }
 0x573   : > { %2479 = shalt.err (!%p2476_p8)
}
 0x574   : > { %s2526_s17 = smov 128   ;;  %s2527_s19 = smov 8  }
 0x575   : > { %2264 = dma.vmem_to_hbm [thread:$0]  (%p2586_p5), %s2798_s25, 512, %s2796_s28, %s2803_s29, %s2526_s17, %s2526_s17, %s2527_s19  }
 0x576 PF: > { %p2276_p9 = scmp.ge.s32.totalorder %s2518_s15, 2  ;;  %s1802_s20 = sand.u32 1, %s2506_s12  }
 0x577   : > { %p2862_p10 = scmp.ne.s32.totalorder %s2848_s23, 0  ;;  %s1803_s24 = scalar_lea.sflag [#allocation5], %s1802_s20 }
 0x579   : > { %p2271_p11 = pnand %p2276_p9, %p2862_p10 }
 0x57b   : > { %p2272_p12 = pneg %p2271_p11 }
 0x57d   : > { %2501 = dma.done.wait (%p2272_p12), %s1803_s24, 512  }
 0x57e   : > { %2503 = vsyncadd (%p2272_p12), %s1803_s24, 4294966784  ;;  %p14_p13 = scmp.ge.s32.totalorder %s2573_s18, 4   ;;  %s2863_s12 = smov %s2510_s13 }
 0x57f   : > { %s2864_s13 = smov %s2514_s14  ;;  %s2865_s14 = smov %s2584_s21 }
 0x580   : > { %s2866_s15 = smov %s2573_s18  ;;  %16 = sbr.rel (!%p14_p13) target bundleno = 4 (0x4), region = 74 }
 0x585   :  { %1808 = vsyncpa [#allocation4], 1 }
 0x586   :  { %1810 = vsyncpa [#allocation4 + $0x1], 1 }
 0x587   :  { %1811 = vsyncpa [#allocation5], 1 }
 0x588   :  { %1813 = vsyncpa [#allocation5 + $0x1], 1 }

// kernel: tpu_custom_call.1
= control target key start
LH: loop header
LB: loop body
LE: loop exit
PB: predicated region body
PF: predicated region fallthrough
CT: control target
= control target key end

     0   :  { %8 = vsyncpa [#allocation4], 0  ;;  %s2843_s0 = inlined_call_operand.vmem [shape: f32[4,16,4], index: 0, kind: input, shape index: {}]   ;;  %s2844_s1 = inlined_call_operand.hbm [shape: bf16[1792,128], index: 1, kind: input, shape index: {}]   ;;  %s2845_s2 = inlined_call_operand.vmem [shape: f32[8,128], index: 2, kind: input, shape index: {}]   ;;  %s2846_s3 = inlined_call_operand.hbm [shape: f32[4,16,16], index: 3, kind: output, shape index: {}]  }
   0x1   :  { %9 = vsyncpa [#allocation5], 0 }
   0x2   :  { %11 = vsyncpa [#allocation5 + $0x1], 0  ;;  %s2548_s12 = smov 0   ;;  %s2550_s13 = smov 0  }
   0x3   :  { %s2552_s14 = smov 0   ;;  %s2554_s15 = smov 0  }
   0x4 LB: > { %s2569_s16 = sadd.s32 4294967295, %s2518_s15   ;;  %s1861_s17 = sadd.s32 4294967294, %s2518_s15   ;;  %s2518_s15 = sphi %s2554_s15, %s2866_s15   ;;  %s2514_s14 = sphi %s2552_s14, %s2865_s14   ;;  %s2510_s13 = sphi %s2550_s13, %s2864_s13   ;;  %s2506_s12 = sphi %s2548_s12, %s2863_s12  }
   0x5   : > { %s2573_s18 = sadd.s32 1, %s2518_s15   ;;  %s92_s19 = sadd.s32 1, %s2514_s14 }
   0x6   : > { %s89_s20 = ssub.s32 %s2518_s15, %s2573_s18  ;;  %p102_p0 = scmp.ne.s32.totalorder %s2514_s14, %s2510_s13 }
   0x7   : > { %p90_p1 = scmp.eq.s32.totalorder %s89_s20, 0  ;;  %p103_p2 = scmp.eq.s32.totalorder %s2569_s16, 1 }
   0x8   : > { %p108_p3 = scmp.ne.s32.totalorder %s2510_s13, %s2506_s12  ;;  %p109_p4 = scmp.eq.s32.totalorder %s1861_s17, 1 }
   0x9   : > { %s2584_s21 = scalar_select %p90_p1, %s2514_s14, %s92_s19  }
   0xa   : > { %p2586_p5 = por %p103_p2, %p102_p0  ;;  %p2590_p6 = por %p109_p4, %p108_p3 }
   0xb   : > { %p1862_p7 = scmp.ge.s32.totalorder %s2518_s15, 1  ;;  %p116_p8 = scmp.lt.s32.totalorder %s2518_s15, 3 }
   0xc   : > { %s2848_s23 = scalar_select %p2590_p6, 1, 0 }
   0xd   : > { %p2274_p9 = scmp.eq.s32.totalorder %s2569_s16, 0  ;;  %p2597_p10 = pnand %p1862_p7, %p116_p8 }
   0xe   : > { %s2520_s25 = smov [#allocation3]  }
   0xf   : > { %s128_s26 = sshll.u32 %s2520_s25, 4  ;;  %p2266_p11 = pneg %p2597_p10  ;;  %s129_s26 = int_to_ptr.vmem [resolvable:$true] %s128_s26 }
  0x10   : > { %s2439_s27 = scalar_lea.vmem %s129_s26, 14336  ;;  %p2447_p3 = scmp.lt.s32.totalorder %s129_s26, %s129_s26 }
  0x11   : > { %p2267_p12 = pnand %p2274_p9, %p2266_p11  ;;  %p2440_p0 = scmp.ne.s32.totalorder %s129_s26, %s2439_s27 }
  0x12   : > { %p2448_p4 = scmp.lt.s32.totalorder %s2439_s27, %s2439_s27 }
  0x13   : > { %p2430_p13 = pneg %p2267_p12 }
  0x14   : > { %p2449_p6 = por %p2448_p4, %p2447_p3 }
  0x15   : > { %p2442_p1 = pnand %p2440_p0, %p2430_p13 }
  0x17   : > { %p2443_p2 = pneg %p2442_p1 }
  0x19   : > { %p2450_p7 = pnand %p2449_p6, %p2443_p2 }
  0x1b   : > { %2453 = shalt.err (!%p2450_p7)
}
  0x1c   : > { %s2521_s28 = smov 64   ;;  %s2522_s29 = smov 4  }
  0x1d   : > { %2269 = dma.hbm_to_vmem [thread:$0]  (!%p2267_p12), %s2844_s1, 14336, %s129_s26, [#allocation4], %s2521_s28, %s2521_s28, %s2522_s29  }
  0x1e   : > { %157 = sbr.rel (%p2597_p10) target bundleno = 1398 (0x576), region = 32 }
  0x23   : > { %2497 = dma.done.wait (%p2274_p9), [#allocation4], 14336  }
  0x24   : > { %2499 = vsyncadd (%p2274_p9), [#allocation4], 4294952960  ;;  %v2523_v0 = vmov 0.0   ;;  %s1868_s5 = sshll.u32 %s2569_s16, 1  ;;  %v2316_v1 = vld [vmem:[#allocation3 + $0x78] sm:$0xff]   ;;  %v2318_v3 = vld [vmem:[#allocation3 + $0x70] sm:$0xff]   ;;  %v209_v8 = vlaneseq }
  0x25   : > { %191 = vst [vmem:[#allocation2] sm:$0xff] %v2523_v0  ;;  %192 = vst [vmem:[#allocation2 + $0x8] sm:$0xff] %v2523_v0  ;;  %v2317_v2 = vld [vmem:[#allocation3 + $0x38] sm:$0xff]   ;;  %2032 = vmatprep.subr.bf16.mxu0 %v2316_v1  ;;  %p183_p6 = scmp.lt.s32.totalorder %s1868_s5, 3  ;;  %v2319_v4 = vld [vmem:[#allocation3 + $0x30] sm:$0xff]   ;;  %vm197_vm0 = vcmask 31744  }
  0x26   : > { %194 = vst [vmem:[#allocation2 + $0x18] sm:$0xff] %v2523_v0  ;;  %193 = vst [vmem:[#allocation2 + $0x10] sm:$0xff] %v2523_v0  ;;  %2033 = vmatpush3.bf16.msra.mxu0 %v2317_v2  ;;  %v2320_v5 = vld [vmem:[#allocation3 + $0x68] sm:$0xff]   ;;  %v2322_v7 = vld [vmem:[#allocation3 + $0x60] sm:$0xff]   ;;  %v2618_v12 = vshrl.u32 %v209_v8, 7  ;;  %vm2524_vm4 = vmmov 1  }
  0x27   : > { %2034 = vmatprep.subr.bf16.mxu0 %v2318_v3  ;;  %s2868_s5 = smov (!%p183_p6, %s1868_s5), 3  ;;  %v2321_v6 = vld [vmem:[#allocation3 + $0x28] sm:$0xff]   ;;  %v2323_v9 = vld [vmem:[#allocation3 + $0x20] sm:$0xff]   ;;  %v2324_v10 = vld [vmem:[#allocation3 + $0x58] sm:$0xff]   ;;  %s179_s17 = sand.u32 1, %s2510_s13  }
  0x28   : > { %s2029_s6 = sshll.u32 %s2868_s5, 4  ;;  %v2325_v11 = vld [vmem:[#allocation3 + $0x18] sm:$0xff]   ;;  %v2326_v13 = vld [vmem:[#allocation3 + $0x50] sm:$0xff]   ;;  %v212_v17 = vadd.s32 16, %v2618_v12  ;;  %v2328_v20 = vld [vmem:[#allocation3 + $0x48] sm:$0xff]   ;;  %v2625_v21 = vand.u32 15, %v2618_v12 }
  0x29   : > { %s187_s9 = scalar_lea.vmem %s2843_s0, %s2029_s6  ;;  %v2327_v18 = vld [vmem:[#allocation3 + $0x10] sm:$0xff]   ;;  %v2332_v22 = vld [vmem:[#allocation3 + $0xf8] sm:$0xff]   ;;  %v2329_v26 = vld [vmem:[#allocation3 + $0x8] sm:$0xff]   ;;  %vm267_vm2 = vcmp.lt.s32.totalorder %v2618_v12, 1  ;;  %vm807_vm7 = vcmp.lt.s32.totalorder %v2618_v12, 2  ;;  %vm1230_vm12 = vcmp.lt.s32.totalorder %v2618_v12, 4 }
  0x2a   : > { %2035 = vmatpush3.bf16.msra.mxu0 %v2319_v4  ;;  %v195_v14 = vld [vmem:[%s187_s9] sm:$0xff]  ;;  %v196_v15 = vld [vmem:[%s187_s9 + $0x8] sm:$0xff]  ;;  %v1872_v16 = vld [vmem:[%s187_s9 + $0x18] sm:$0xff]  ;;  %v2628_v24 = vand.u32 15, %v212_v17  ;;  %2060 = vmatprep.subr.bf16.mxu1 %v2332_v22  ;;  %vm272_vm1 = vcmp.ge.s32.totalorder %v2625_v21, 1  ;;  %vm812_vm8 = vcmp.ge.s32.totalorder %v2625_v21, 2 }
  0x2b   : > { %2036 = vmatprep.subr.bf16.mxu0 %v2320_v5  ;;  %198 = vst.msk [vmem:[#allocation2] sm:$0xff] %vm197_vm0, %v195_v14  ;;  %199 = vst.msk [vmem:[#allocation2 + $0x8] sm:$0xff] %vm197_vm0, %v196_v15  ;;  %v1871_v19 = vld [vmem:[%s187_s9 + $0x10] sm:$0xff]  ;;  %v2333_v23 = vld [vmem:[#allocation3 + $0xb8] sm:$0xff]   ;;  %v326_v5 = vsub.s32 0, %v2618_v12  ;;  %vm1235_vm13 = vcmp.ge.s32.totalorder %v2625_v21, 4 }
  0x2c   : > { %204 = vst.msk [vmem:[#allocation2 + $0x18] sm:$0xff] %vm197_vm0, %v1872_v16  ;;  %203 = vst.msk [vmem:[#allocation2 + $0x10] sm:$0xff] %vm197_vm0, %v1871_v19  ;;  %v2334_v25 = vld [vmem:[#allocation3 + $0xf0] sm:$0xff]   ;;  %2061 = vmatpush3.bf16.msra.mxu1 %v2333_v23  ;;  %v2330_v27 = vld [vmem:[#allocation3 + $0x40] sm:$0xff]   ;;  %vm274_vm3 = vcmp.ge.s32.totalorder %v2628_v24, 1  ;;  %vm814_vm10 = vcmp.ge.s32.totalorder %v2628_v24, 2 }
  0x2d   : > { %2062 = vmatprep.subr.bf16.mxu1 %v2334_v25  ;;  %v2336_v28 = vld [vmem:[#allocation3 + $0xb0] sm:$0xff]   ;;  %v2331_v32 = vld [vmem:[#allocation3] sm:$0xff]   ;;  %vm2636_vm5 = vmpackc.low %vm2524_vm4, %vm272_vm1  ;;  %vm1237_vm15 = vcmp.ge.s32.totalorder %v2628_v24, 4  ;;  %s1867_s19 = sshll.u32 %s179_s17, 5  ;;  %vm1766_vm1 = vcmask 130048   ;;  %s2031_s24 = sshll.u32 %s2569_s16, 9 }
  0x2e   : > { %2037 = vmatpush3.bf16.msra.mxu0 %v2321_v6  ;;  %v2335_v40 = vld [vmem:[#allocation3 + $0x138] sm:$0xff]   ;;  %vm2647_vm6 = vmpackc.low %vm2524_vm4, %vm274_vm3  ;;  %v2337_v49 = vld [vmem:[#allocation3 + $0xe8] sm:$0xff]   ;;  %s181_s20 = scalar_lea.vmem [#allocation6], %s1867_s19  ;;  %s2796_s28 = scalar_lea.hbm %s2846_s3, %s2031_s24 }
  0x2f   : > { %2038 = vmatprep.subr.bf16.mxu0 %v2322_v7  ;;  %v2338_v50 = vld [vmem:[#allocation3 + $0x130] sm:$0xff]   ;;  %v2339_v51 = vld [vmem:[#allocation3 + $0xa8] sm:$0xff]   ;;  %v2340_v52 = vld [vmem:[#allocation3 + $0xe0] sm:$0xff]   ;;  %s1787_s25 = sshll.u32 %s181_s20, 4  ;;  %s2803_s29 = scalar_lea.sflag [#allocation5], %s179_s17  ;;  %s2798_s25 = int_to_ptr.vmem [resolvable:$true] %s1787_s25 }
  0x30   : > { %2063 = vmatpush3.bf16.msra.mxu1 %v2336_v28  ;;  %v2341_v53 = vld [vmem:[#allocation3 + $0x128] sm:$0xff]   ;;  %v2342_v54 = vld [vmem:[#allocation3 + $0xa0] sm:$0xff]   ;;  %v2343_v55 = vld [vmem:[#allocation3 + $0xd8] sm:$0xff]   ;;  %s2454_s16 = scalar_lea.vmem %s2798_s25, 512  ;;  %s2525_s30 = smov [#allocation6]  }
  0x31   : > { %2064 = vmatprep.subr.bf16.mxu1 %v2337_v49  ;;  %v2344_v56 = vld [vmem:[#allocation3 + $0x120] sm:$0xff]   ;;  %v2345_v57 = vld [vmem:[#allocation3 + $0x98] sm:$0xff]   ;;  %v2346_v58 = vld [vmem:[#allocation3 + $0xd0] sm:$0xff]   ;;  %p2455_p8 = scmp.ne.s32.totalorder %s2798_s25, %s2454_s16  ;;  %s2458_s4 = sshll.u32 %s2525_s30, 4  ;;  %s2459_s4 = int_to_ptr.vmem [resolvable:$false] %s2458_s4 }
  0x32   : > { %2039 = vmatpush3.bf16.msra.mxu0 %v2323_v9  ;;  %v205_v29 = vld [vmem:[#allocation2] sm:$0xff]  ;;  %v206_v30 = vld [vmem:[#allocation2 + $0x8] sm:$0xff]  ;;  %v2347_v59 = vld [vmem:[#allocation3 + $0x118] sm:$0xff]   ;;  %s2460_s5 = scalar_lea.vmem %s2459_s4, 1024  ;;  %p2461_p11 = scmp.lt.s32.totalorder %s2798_s25, %s2459_s4 }
  0x33   : > { %2040 = vmatprep.subr.bf16.mxu0 %v2324_v10  ;;  %v208_v31 = vld [vmem:[#allocation2 + $0x18] sm:$0xff]  ;;  %v263_v33 = vrot.slane %v205_v29, 7  ;;  %v264_v34 = vrot.slane %v206_v30, 7  ;;  %v290_v36 = vpack.c.bf16 %v206_v30, %v205_v29  ;;  %v207_v38 = vld [vmem:[#allocation2 + $0x10] sm:$0xff]  ;;  %v2349_v61 = vld [vmem:[#allocation3 + $0xc8] sm:$0xff]   ;;  %p2456_p9 = pnand %p2455_p8, %p2586_p5  ;;  %p2462_p12 = scmp.lt.s32.totalorder %s2460_s5, %s2454_s16 }
  0x34   : > { %v266_v35 = vrot.slane %v208_v31, 7  ;;  %v265_v39 = vrot.slane %v207_v38, 7  ;;  %v291_v44 = vpack.c.bf16 %v208_v31, %v207_v38  ;;  %2065 = vmatpush3.bf16.msra.mxu1 %v2339_v51  ;;  %v2348_v60 = vld [vmem:[#allocation3 + $0x90] sm:$0xff]   ;;  %v2351_v63 = vld [vmem:[#allocation3 + $0x88] sm:$0xff]   ;;  %v2352_v0 = vld [vmem:[#allocation3 + $0xc0] sm:$0xff]  }
  0x35   : > { %v270_v41 = vsel %vm267_vm2, %v263_v33, %v264_v34  ;;  %456 = vmatprep.mubr.bf16.mxu0 %v290_v36  ;;  %2066 = vmatprep.subr.bf16.mxu1 %v2340_v52  ;;  %v2350_v62 = vld [vmem:[#allocation3 + $0x110] sm:$0xff]   ;;  %v2353_v1 = vld [vmem:[#allocation3 + $0x108] sm:$0xff]   ;;  %v2354_v2 = vld [vmem:[#allocation3 + $0x80] sm:$0xff]   ;;  %p2457_p10 = pneg %p2456_p9  ;;  %p2463_p13 = por %p2462_p12, %p2461_p11 }
  0x36   : > { %2041 = vmatpush3.bf16.msra.mxu0 %v2325_v11  ;;  %v271_v42 = vsel %vm267_vm2, %v266_v35, %v263_v33  ;;  %v268_v46 = vsel %vm267_vm2, %v265_v39, %v266_v35  ;;  %v269_v47 = vsel %vm267_vm2, %v264_v34, %v265_v39  ;;  %v2355_v3 = vld [vmem:[#allocation3 + $0x100] sm:$0xff]   ;;  %v2356_v4 = vld [vmem:[#allocation3 + $0x1b8] sm:$0xff]   ;;  %v2361_v37 = vld [vmem:[#allocation3 + $0x168] sm:$0xff]  }
  0x37   : > { %2042 = vmatprep.subr.bf16.mxu0 %v2326_v13  ;;  %v1890_v43 = vpack.c.bf16 %v270_v41, %v271_v42  ;;  %v1893_v48 = vpack.c.bf16 %v268_v46, %v269_v47  ;;  %v2663_v7 = vld [vmem:[%s2845_s2] sm:$0xff]  ;;  %v2357_v38 = vld [vmem:[#allocation3 + $0x178] sm:$0xff]   ;;  %v2358_v46 = vld [vmem:[#allocation3 + $0x1b0] sm:$0xff]   ;;  %p2464_p0 = pnand %p2463_p13, %p2457_p10 }
  0x38   : > { %2067 = vmatpush3.bf16.msra.mxu1 %v2342_v54  ;;  %v327_v10 = vrot.slane %v2663_v7, %v326_v5  ;;  %v2359_v47 = vld [vmem:[#allocation3 + $0x170] sm:$0xff]   ;;  %v2362_v49 = vld [vmem:[#allocation3 + $0x1a0] sm:$0xff]   ;;  %v2364_v51 = vld [vmem:[#allocation3 + $0x198] sm:$0xff]  }
  0x39   : > { %2068 = vmatprep.subr.bf16.mxu1 %v2343_v55  ;;  %v2365_v52 = vld [vmem:[#allocation3 + $0x158] sm:$0xff]   ;;  %v2367_v54 = vld [vmem:[#allocation3 + $0x150] sm:$0xff]   ;;  %v2368_v45 = vld [vmem:[#allocation3 + $0x188] sm:$0xff]  }
  0x3a   : > { %2043 = vmatpush3.bf16.msra.mxu0 %v2327_v18  ;;  %v2369_v55 = vld [vmem:[#allocation3 + $0x148] sm:$0xff]   ;;  %vm2702_vm9 = vmpackc.low %vm2524_vm4, %vm812_vm8  ;;  %v2408_v24 = vld [vmem:[#allocation3 + $0x358] sm:$0xff]  }
  0x3b   : > { %2044 = vmatprep.subr.bf16.mxu0 %v2328_v20  ;;  %vm2717_vm11 = vmpackc.low %vm2524_vm4, %vm814_vm10 }
  0x3c   : > { %2069 = vmatpush3.bf16.msra.mxu1 %v2345_v57  ;;  %v2371_v57 = vld [vmem:[#allocation3 + $0x140] sm:$0xff]   ;;  %vm2750_vm14 = vmpackc.low %vm2524_vm4, %vm1235_vm13 }
  0x3d   : > { %2070 = vmatprep.subr.bf16.mxu1 %v2346_v58  ;;  %v2372_v58 = vld [vmem:[#allocation3 + $0x238] sm:$0xff]   ;;  %vm2762_vm0 = vmpackc.low %vm2524_vm4, %vm1237_vm15 }
  0x3e   : > { %2045 = vmatpush3.bf16.msra.mxu0 %v2329_v26 }
  0x3f   : > { %2046 = vmatprep.subr.bf16.mxu0 %v2330_v27 }
  0x40   : > { %2071 = vmatpush3.bf16.msra.mxu1 %v2348_v60  ;;  %v2374_v60 = vld [vmem:[#allocation3 + $0x230] sm:$0xff]  }
  0x41   : > { %2072 = vmatprep.subr.bf16.mxu1 %v2349_v61  ;;  %v2375_v61 = vld [vmem:[#allocation3 + $0x1f0] sm:$0xff]  }
  0x42   : > { %2047 = vmatpush3.bf16.msra.mxu0 %v2331_v32 }
  0x43   : > { %2220 = vmatprep.subr.bf16.mxu0 %v2335_v40 }
  0x44   : > { %2073 = vmatpush3.bf16.msra.mxu1 %v2351_v63  ;;  %v527_v63 = vsub.s32 1, %v2618_v12 }
  0x45   : > { %1891 = vmatmul.mubr.msk.bf16.vlgmr.msra.gmra.mxu0 %vm2636_vm5, %v1890_v43  ;;  %2074 = vmatprep.subr.bf16.mxu1 %v2352_v0 }
  0x46   : > { %464 = vmatprep.mubr.bf16.mxu0 %v291_v44  ;;  %2221 = vmatpush3.bf16.msra.mxu0 %v2335_v40 }
  0x47   : > { %2222 = vmatprep.subr.bf16.mxu0 %v2338_v50 }
  0x48   : > { %2075 = vmatpush3.bf16.msra.mxu1 %v2354_v2 }
  0x49   : > { %2098 = vmatprep.subr.bf16.mxu1 %v2356_v4 }
  0x4a   : > { %2223 = vmatpush3.bf16.msra.mxu0 %v2338_v50  ;;  %v2363_v50 = vld [vmem:[#allocation3 + $0x160] sm:$0xff]  }
  0x4b   : > { %2224 = vmatprep.subr.bf16.mxu0 %v2341_v53 }
  0x4d   : > { %1894 = vmatmul.mubr.msk.bf16.gmra.mxu0 %vm2647_vm6, %v1893_v48  ;;  %v2360_v48 = vld [vmem:[#allocation3 + $0x1a8] sm:$0xff]  }
  0x4e   : > { %2236 = vmatprep.mubr.bf16.mxu0 %v290_v36  ;;  %2225 = vmatpush3.bf16.msra.mxu0 %v2341_v53  ;;  %v2366_v53 = vld [vmem:[#allocation3 + $0x190] sm:$0xff]  }
  0x4f   : > { %2226 = vmatprep.subr.bf16.mxu0 %v2344_v56 }
  0x52   : > { %2227 = vmatpush3.bf16.msra.mxu0 %v2344_v56  ;;  %v2370_v56 = vld [vmem:[#allocation3 + $0x180] sm:$0xff]  }
  0x53   : > { %2228 = vmatprep.subr.bf16.mxu0 %v2347_v59 }
  0x56   : > { %2229 = vmatpush3.bf16.msra.mxu0 %v2347_v59  ;;  %v2373_v59 = vld [vmem:[#allocation3 + $0x1f8] sm:$0xff]  }
  0x57   : > { %2230 = vmatprep.subr.bf16.mxu0 %v2350_v62 }
  0x5a   : > { %2231 = vmatpush3.bf16.msra.mxu0 %v2350_v62 }
  0x5b   : > { %2232 = vmatprep.subr.bf16.mxu0 %v2353_v1 }
  0x5e   : > { %2233 = vmatpush3.bf16.msra.mxu0 %v2353_v1  ;;  %v696_v1 = vsub.s32 2, %v2618_v12 }
  0x5f   : > { %2234 = vmatprep.subr.bf16.mxu0 %v2355_v3 }
  0x62   : > { %2235 = vmatpush3.bf16.msra.mxu0 %v2355_v3  ;;  %v528_v3 = vrot.slane %v2663_v7, %v527_v63  ;;  %v2383_v63 = vld [vmem:[#allocation3 + $0x1d0] sm:$0xff]  }
  0x63   : > { %2126 = vmatprep.subr.bf16.mxu0 %v2372_v58  ;;  %v2378_v58 = vld [vmem:[#allocation3 + $0x220] sm:$0xff]  }
  0x65   : > { %2237 = vmatmul.mubr.bf16.vlgmr.msra.gmra.mxu0 %v291_v44 }
  0x66   : > { %2127 = vmatpush3.bf16.msra.mxu0 %v2373_v59  ;;  %v2379_v59 = vld [vmem:[#allocation3 + $0x1e0] sm:$0xff]  }
  0x67   : > { %2128 = vmatprep.subr.bf16.mxu0 %v2374_v60  ;;  %v2380_v60 = vld [vmem:[#allocation3 + $0x218] sm:$0xff]  }
  0x6a   : > { %2129 = vmatpush3.bf16.msra.mxu0 %v2375_v61  ;;  %v2381_v61 = vld [vmem:[#allocation3 + $0x1d8] sm:$0xff]  }
 0x105   : > { %v2048_v6 = vpop.f32.mrf.mxu0 }
 0x107   : > { %v2049_v8 = vpop.f32.mrf.mxu0 }
 0x108   : > { %v2050_v9 = vadd.f32 %v2049_v8, %v2048_v6  ;;  %v697_v8 = vrot.slane %v2663_v7, %v696_v1  ;;  %v2385_v1 = vld [vmem:[#allocation3 + $0x1c8] sm:$0xff]  }
 0x109   : > { %v2051_v11 = vpop.f32.mrf.mxu0 }
 0x10a   : > { %v459_v15 = vadd.f32 %v2050_v9, %v327_v10 }
 0x10b   : > { %v2052_v13 = vpop.f32.mrf.mxu0 }
 0x10c   : > { %v2053_v14 = vadd.f32 %v2052_v13, %v2051_v11  ;;  %v473_v19 = vmax.f32 %v459_v15, 0.0 }
 0x10d   : > { %v2054_v16 = vpop.f32.mrf.mxu0 }
 0x10e   : > { %v462_v17 = vadd.f32 %v2053_v14, %v327_v10  ;;  %v477_v33 = vrot.slane %v473_v19, 7 }
 0x10f   : > { %v2055_v18 = vpop.f32.mrf.mxu0 }
 0x110   : > { %v474_v20 = vmax.f32 %v462_v17, 0.0  ;;  %v2056_v26 = vadd.f32 %v2055_v18, %v2054_v16 }
 0x111   : > { %v2057_v22 = vpop.f32.mrf.mxu0 }
 0x112   : > { %v491_v23 = vpack.c.bf16 %v474_v20, %v473_v19  ;;  %v467_v29 = vadd.f32 %v2056_v26, %v327_v10  ;;  %v478_v31 = vrot.slane %v474_v20, 7 }
 0x113   : > { %v2058_v25 = vpop.f32.mrf.mxu0 }
 0x114   : > { %v2059_v27 = vadd.f32 %v2058_v25, %v2057_v22  ;;  %657 = vmatprep.mubr.bf16.mxu1 %v491_v23  ;;  %v475_v34 = vmax.f32 %v467_v29, 0.0  ;;  %v483_v35 = vsel %vm267_vm2, %v477_v33, %v478_v31 }
 0x116   : > { %v470_v28 = vadd.f32 %v2059_v27, %v327_v10  ;;  %v479_v41 = vrot.slane %v475_v34, 7 }
 0x118   : > { %v476_v30 = vmax.f32 %v470_v28, 0.0  ;;  %v482_v43 = vsel %vm267_vm2, %v478_v31, %v479_v41 }
 0x11a   : > { %v480_v32 = vrot.slane %v476_v30, 7  ;;  %v492_v40 = vpack.c.bf16 %v476_v30, %v475_v34 }
 0x11c   : > { %v484_v36 = vsel %vm267_vm2, %v480_v32, %v477_v33  ;;  %v481_v42 = vsel %vm267_vm2, %v479_v41, %v480_v32 }
 0x11d   : > { %v1912_v39 = vpack.c.bf16 %v483_v35, %v484_v36  ;;  %v1915_v44 = vpack.c.bf16 %v481_v42, %v482_v43 }
 0x11f   : > { %1913 = vmatmul.mubr.msk.bf16.vlgmr.msra.gmra.mxu1 %vm2636_vm5, %v1912_v39 }
 0x120   : > { %665 = vmatprep.mubr.bf16.mxu1 %v492_v40  ;;  %2099 = vmatpush3.bf16.msra.mxu1 %v2357_v38 }
 0x121   : > { %2100 = vmatprep.subr.bf16.mxu1 %v2358_v46 }
 0x124   : > { %2101 = vmatpush3.bf16.msra.mxu1 %v2359_v47 }
 0x125   : > { %2102 = vmatprep.subr.bf16.mxu1 %v2360_v48  ;;  %v2238_v62 = vpop.f32.mrf.mxu0 }
 0x126   : > { %v789_v39 = vadd.f32 %v2238_v62, %v697_v8  ;;  %v2382_v62 = vld [vmem:[#allocation3 + $0x210] sm:$0xff]  }
 0x127   : > { %1916 = vmatmul.mubr.msk.bf16.gmra.mxu1 %vm2647_vm6, %v1915_v44  ;;  %v780_v0 = vpop.f32.mrf.mxu0 }
 0x128   : > { %2103 = vmatpush3.bf16.msra.mxu1 %v2361_v37  ;;  %v781_v16 = vadd.f32 %v780_v0, %v697_v8  ;;  %v2384_v0 = vld [vmem:[#allocation3 + $0x208] sm:$0xff]  }
 0x129   : > { %2104 = vmatprep.subr.bf16.mxu1 %v2362_v49  ;;  %v2239_v5 = vpop.f32.mrf.mxu0  ;;  %v2394_v49 = vld [vmem:[#allocation3 + $0x2a0] sm:$0xff]  }
 0x12a   : > { %v792_v35 = vadd.f32 %v2239_v5, %v697_v8  ;;  %v2389_v5 = vld [vmem:[#allocation3 + $0x278] sm:$0xff]  }
 0x12b   : > { %v783_v13 = vpop.f32.mrf.mxu0 }
 0x12c   : > { %2105 = vmatpush3.bf16.msra.mxu1 %v2363_v50  ;;  %v784_v19 = vadd.f32 %v783_v13, %v697_v8 }
 0x12d   : > { %2106 = vmatprep.subr.bf16.mxu1 %v2364_v51 }
 0x130   : > { %2107 = vmatpush3.bf16.msra.mxu1 %v2365_v52 }
 0x131   : > { %2108 = vmatprep.subr.bf16.mxu1 %v2366_v53 }
 0x134   : > { %2109 = vmatpush3.bf16.msra.mxu1 %v2367_v54 }
 0x135   : > { %2110 = vmatprep.subr.bf16.mxu1 %v2368_v45  ;;  %v2400_v45 = vld [vmem:[#allocation3 + $0x288] sm:$0xff]  }
 0x138   : > { %2111 = vmatpush3.bf16.msra.mxu1 %v2369_v55 }
 0x139   : > { %2112 = vmatprep.subr.bf16.mxu1 %v2370_v56  ;;  %v2376_v56 = vld [vmem:[#allocation3 + $0x228] sm:$0xff]  }
 0x13a   : > { %2130 = vmatprep.subr.bf16.mxu0 %v2376_v56  ;;  %v2397_v56 = vld [vmem:[#allocation3 + $0x258] sm:$0xff]  }
 0x13c   : > { %2113 = vmatpush3.bf16.msra.mxu1 %v2371_v57  ;;  %v2377_v57 = vld [vmem:[#allocation3 + $0x1e8] sm:$0xff]  }
 0x13d   : > { %2131 = vmatpush3.bf16.msra.mxu0 %v2377_v57  ;;  %v2398_v57 = vld [vmem:[#allocation3 + $0x290] sm:$0xff]  }
 0x13e   : > { %2132 = vmatprep.subr.bf16.mxu0 %v2378_v58  ;;  %v2399_v58 = vld [vmem:[#allocation3 + $0x250] sm:$0xff]  }
 0x141   : > { %2133 = vmatpush3.bf16.msra.mxu0 %v2379_v59  ;;  %v2401_v59 = vld [vmem:[#allocation3 + $0x248] sm:$0xff]  }
 0x142   : > { %2134 = vmatprep.subr.bf16.mxu0 %v2380_v60  ;;  %v2402_v60 = vld [vmem:[#allocation3 + $0x280] sm:$0xff]  }
 0x145   : > { %2135 = vmatpush3.bf16.msra.mxu0 %v2381_v61  ;;  %v2403_v61 = vld [vmem:[#allocation3 + $0x240] sm:$0xff]  }
 0x146   : > { %2136 = vmatprep.subr.bf16.mxu0 %v2382_v62  ;;  %v2404_v62 = vld [vmem:[#allocation3 + $0x378] sm:$0xff]  }
 0x149   : > { %2137 = vmatpush3.bf16.msra.mxu0 %v2383_v63  ;;  %v2412_v63 = vld [vmem:[#allocation3 + $0x338] sm:$0xff]  }
 0x14a   : > { %2138 = vmatprep.subr.bf16.mxu0 %v2384_v0  ;;  %v2413_v0 = vld [vmem:[#allocation3 + $0x2f8] sm:$0xff]  }
 0x14d   : > { %2139 = vmatpush3.bf16.msra.mxu0 %v2385_v1  ;;  %v2414_v1 = vld [vmem:[#allocation3 + $0x330] sm:$0xff]  }
 0x1df   : > { %v2076_v2 = vpop.f32.mrf.mxu1 }
 0x1e1   : > { %v2077_v4 = vpop.f32.mrf.mxu1 }
 0x1e2   : > { %v2078_v6 = vadd.f32 %v2077_v4, %v2076_v2  ;;  %v2386_v2 = vld [vmem:[#allocation3 + $0x200] sm:$0xff]   ;;  %v2388_v4 = vld [vmem:[#allocation3 + $0x2b8] sm:$0xff]  }
 0x1e3   : > { %v2079_v9 = vpop.f32.mrf.mxu1  ;;  %2140 = vmatprep.subr.bf16.mxu0 %v2386_v2  ;;  %2154 = vmatprep.subr.bf16.mxu1 %v2388_v4  ;;  %v2415_v2 = vld [vmem:[#allocation3 + $0x2f0] sm:$0xff]  }
 0x1e4   : > { %v660_v10 = vadd.f32 %v2078_v6, %v528_v3  ;;  %v866_v6 = vsub.s32 3, %v2618_v12 }
 0x1e5   : > { %v2080_v11 = vpop.f32.mrf.mxu1 }
 0x1e6   : > { %v674_v14 = vmax.f32 %v660_v10, 0.0  ;;  %v2081_v15 = vadd.f32 %v2080_v11, %v2079_v9  ;;  %v867_v10 = vrot.slane %v2663_v7, %v866_v6 }
 0x1e7   : > { %v2082_v17 = vpop.f32.mrf.mxu1 }
 0x1e8   : > { %v663_v18 = vadd.f32 %v2081_v15, %v528_v3  ;;  %v795_v23 = vadd.f32 %v781_v16, %v674_v14 }
 0x1e9   : > { %v2083_v20 = vpop.f32.mrf.mxu1 }
 0x1ea   : > { %v675_v22 = vmax.f32 %v663_v18, 0.0  ;;  %v2084_v25 = vadd.f32 %v2083_v20, %v2082_v17  ;;  %v2682_v29 = vmax.f32 %v795_v23, 0.0 }
 0x1eb   : > { %v2085_v26 = vpop.f32.mrf.mxu1 }
 0x1ec   : > { %v796_v27 = vadd.f32 %v784_v19, %v675_v22  ;;  %v668_v30 = vadd.f32 %v2084_v25, %v528_v3  ;;  %v803_v44 = vrot.slane %v2682_v29, 6 }
 0x1ed   : > { %v2086_v28 = vpop.f32.mrf.mxu1 }
 0x1ee   : > { %v2684_v31 = vmax.f32 %v796_v27, 0.0  ;;  %v2087_v32 = vadd.f32 %v2086_v28, %v2085_v26  ;;  %v676_v36 = vmax.f32 %v668_v30, 0.0 }
 0x1f0   : > { %v671_v33 = vadd.f32 %v2087_v32, %v528_v3  ;;  %v830_v34 = vpack.c.bf16 %v2684_v31, %v2682_v29  ;;  %v797_v41 = vadd.f32 %v789_v39, %v676_v36  ;;  %v804_v42 = vrot.slane %v2684_v31, 6  ;;  %v2387_v3 = vld [vmem:[#allocation3 + $0x1c0] sm:$0xff]  }
 0x1f1   : > { %2141 = vmatpush3.bf16.msra.mxu0 %v2387_v3  ;;  %v1067_v3 = vsub.s32 4, %v2618_v12 }
 0x1f2   : > { %v677_v38 = vmax.f32 %v671_v33, 0.0  ;;  %996 = vmatprep.mubr.bf16.mxu1 %v830_v34  ;;  %v2695_v47 = vmax.f32 %v797_v41, 0.0  ;;  %v810_v48 = vsel %vm807_vm7, %v803_v44, %v804_v42  ;;  %2182 = vmatprep.subr.bf16.mxu0 %v2412_v63  ;;  %v2423_v63 = vld [vmem:[#allocation3 + $0x2d0] sm:$0xff]  }
 0x1f4   : > { %v798_v40 = vadd.f32 %v792_v35, %v677_v38  ;;  %v805_v52 = vrot.slane %v2695_v47, 6 }
 0x1f6   : > { %v2689_v43 = vmax.f32 %v798_v40, 0.0  ;;  %v809_v54 = vsel %vm807_vm7, %v804_v42, %v805_v52 }
 0x1f8   : > { %v806_v46 = vrot.slane %v2689_v43, 6  ;;  %v831_v51 = vpack.c.bf16 %v2689_v43, %v2695_v47 }
 0x1fa   : > { %v811_v37 = vsel %vm807_vm7, %v806_v46, %v803_v44  ;;  %v808_v53 = vsel %vm807_vm7, %v805_v52, %v806_v46  ;;  %v2392_v52 = vld [vmem:[#allocation3 + $0x2a8] sm:$0xff]  }
 0x1fb   : > { %v1942_v50 = vpack.c.bf16 %v810_v48, %v811_v37  ;;  %v1945_v55 = vpack.c.bf16 %v808_v53, %v809_v54  ;;  %v2393_v53 = vld [vmem:[#allocation3 + $0x268] sm:$0xff]   ;;  %v2395_v54 = vld [vmem:[#allocation3 + $0x260] sm:$0xff]  }
 0x1fd   : > { %1943 = vmatmul.mubr.msk.bf16.vlgmr.msra.gmra.mxu1 %vm2702_vm9, %v1942_v50  ;;  %v2390_v50 = vld [vmem:[#allocation3 + $0x2b0] sm:$0xff]  }
 0x1fe   : > { %1004 = vmatprep.mubr.bf16.mxu1 %v831_v51  ;;  %2155 = vmatpush3.bf16.msra.mxu1 %v2389_v5  ;;  %v2391_v51 = vld [vmem:[#allocation3 + $0x270] sm:$0xff]   ;;  %v1068_v5 = vrot.slane %v2663_v7, %v1067_v3  ;;  %v2427_v3 = vld [vmem:[#allocation3 + $0x2c0] sm:$0xff]  }
 0x1ff   : > { %2156 = vmatprep.subr.bf16.mxu1 %v2390_v50 }
 0x202   : > { %2157 = vmatpush3.bf16.msra.mxu1 %v2391_v51 }
 0x203   : > { %2158 = vmatprep.subr.bf16.mxu1 %v2392_v52 }
 0x205   : > { %1946 = vmatmul.mubr.msk.bf16.gmra.mxu1 %vm2717_vm11, %v1945_v55  ;;  %v2396_v55 = vld [vmem:[#allocation3 + $0x298] sm:$0xff]  }
 0x206   : > { %2159 = vmatpush3.bf16.msra.mxu1 %v2393_v53 }
 0x207   : > { %2160 = vmatprep.subr.bf16.mxu1 %v2394_v49  ;;  %v2407_v49 = vld [vmem:[#allocation3 + $0x360] sm:$0xff]  }
 0x20a   : > { %2161 = vmatpush3.bf16.msra.mxu1 %v2395_v54  ;;  %v2409_v54 = vld [vmem:[#allocation3 + $0x350] sm:$0xff]  }
 0x20b   : > { %2162 = vmatprep.subr.bf16.mxu1 %v2396_v55  ;;  %v2410_v55 = vld [vmem:[#allocation3 + $0x348] sm:$0xff]  }
 0x20e   : > { %2163 = vmatpush3.bf16.msra.mxu1 %v2397_v56  ;;  %v2411_v56 = vld [vmem:[#allocation3 + $0x340] sm:$0xff]  }
 0x20f   : > { %2164 = vmatprep.subr.bf16.mxu1 %v2398_v57  ;;  %v2416_v57 = vld [vmem:[#allocation3 + $0x328] sm:$0xff]  }
 0x212   : > { %2165 = vmatpush3.bf16.msra.mxu1 %v2399_v58  ;;  %v2417_v58 = vld [vmem:[#allocation3 + $0x2e8] sm:$0xff]  }
 0x213   : > { %2166 = vmatprep.subr.bf16.mxu1 %v2400_v45  ;;  %v2418_v45 = vld [vmem:[#allocation3 + $0x320] sm:$0xff]  }
 0x216   : > { %2167 = vmatpush3.bf16.msra.mxu1 %v2401_v59  ;;  %v2419_v59 = vld [vmem:[#allocation3 + $0x2e0] sm:$0xff]  }
 0x217   : > { %2168 = vmatprep.subr.bf16.mxu1 %v2402_v60  ;;  %v2420_v60 = vld [vmem:[#allocation3 + $0x318] sm:$0xff]  }
 0x21a   : > { %2169 = vmatpush3.bf16.msra.mxu1 %v2403_v61  ;;  %v2421_v61 = vld [vmem:[#allocation3 + $0x2d8] sm:$0xff]  }
 0x21b   : > { %2240 = vmatprep.subr.bf16.mxu1 %v2404_v62 }
 0x2bd   : > { %v2114_v8 = vpop.f32.mrf.mxu1 }
 0x2bf   : > { %v2115_v9 = vpop.f32.mrf.mxu1 }
 0x2c0   : > { %v2116_v11 = vadd.f32 %v2115_v9, %v2114_v8 }
 0x2c1   : > { %v2117_v13 = vpop.f32.mrf.mxu1 }
 0x2c2   : > { %v999_v15 = vadd.f32 %v2116_v11, %v867_v10 }
 0x2c3   : > { %v2118_v14 = vpop.f32.mrf.mxu1 }
 0x2c4   : > { %v2119_v16 = vadd.f32 %v2118_v14, %v2117_v13  ;;  %v1013_v20 = vmax.f32 %v999_v15, 0.0 }
 0x2c5   : > { %v2120_v17 = vpop.f32.mrf.mxu1 }
 0x2c6   : > { %v1002_v18 = vadd.f32 %v2119_v16, %v867_v10  ;;  %v1017_v35 = vrot.slane %v1013_v20, 6 }
 0x2c7   : > { %v2121_v19 = vpop.f32.mrf.mxu1 }
 0x2c8   : > { %v1014_v22 = vmax.f32 %v1002_v18, 0.0  ;;  %v2122_v27 = vadd.f32 %v2121_v19, %v2120_v17 }
 0x2c9   : > { %v2123_v23 = vpop.f32.mrf.mxu1 }
 0x2ca   : > { %v1031_v25 = vpack.c.bf16 %v1014_v22, %v1013_v20  ;;  %v1018_v32 = vrot.slane %v1014_v22, 6  ;;  %v1007_v33 = vadd.f32 %v2122_v27, %v867_v10 }
 0x2cb   : > { %v2124_v26 = vpop.f32.mrf.mxu1 }
 0x2cc   : > { %v2125_v28 = vadd.f32 %v2124_v26, %v2123_v23  ;;  %1197 = vmatprep.mubr.bf16.mxu0 %v1031_v25  ;;  %v1023_v38 = vsel %vm807_vm7, %v1017_v35, %v1018_v32  ;;  %v1015_v39 = vmax.f32 %v1007_v33, 0.0 }
 0x2ce   : > { %v1010_v30 = vadd.f32 %v2125_v28, %v867_v10  ;;  %v1019_v44 = vrot.slane %v1015_v39, 6 }
 0x2d0   : > { %v1016_v34 = vmax.f32 %v1010_v30, 0.0  ;;  %v1022_v48 = vsel %vm807_vm7, %v1018_v32, %v1019_v44 }
 0x2d2   : > { %v1020_v36 = vrot.slane %v1016_v34, 6  ;;  %v1032_v42 = vpack.c.bf16 %v1016_v34, %v1015_v39 }
 0x2d4   : > { %v1024_v40 = vsel %vm807_vm7, %v1020_v36, %v1017_v35  ;;  %v1021_v46 = vsel %vm807_vm7, %v1019_v44, %v1020_v36 }
 0x2d5   : > { %v1964_v41 = vpack.c.bf16 %v1023_v38, %v1024_v40  ;;  %v1967_v37 = vpack.c.bf16 %v1021_v46, %v1022_v48  ;;  %v2405_v46 = vld [vmem:[#allocation3 + $0x370] sm:$0xff]  }
 0x2d7   : > { %1965 = vmatmul.mubr.msk.bf16.vlgmr.msra.gmra.mxu0 %vm2702_vm9, %v1964_v41 }
 0x2d8   : > { %1205 = vmatprep.mubr.bf16.mxu0 %v1032_v42  ;;  %2183 = vmatpush3.bf16.msra.mxu0 %v2413_v0  ;;  %v2424_v0 = vld [vmem:[#allocation3 + $0x308] sm:$0xff]  }
 0x2d9   : > { %2184 = vmatprep.subr.bf16.mxu0 %v2414_v1  ;;  %v2425_v1 = vld [vmem:[#allocation3 + $0x2c8] sm:$0xff]  }
 0x2dc   : > { %2185 = vmatpush3.bf16.msra.mxu0 %v2415_v2  ;;  %v2426_v2 = vld [vmem:[#allocation3 + $0x300] sm:$0xff]  }
 0x2dd   : > { %2186 = vmatprep.subr.bf16.mxu0 %v2416_v57 }
 0x2df   : > { %1968 = vmatmul.mubr.msk.bf16.gmra.mxu0 %vm2717_vm11, %v1967_v37  ;;  %v2406_v37 = vld [vmem:[#allocation3 + $0x368] sm:$0xff]  }
 0x2e0   : > { %2187 = vmatpush3.bf16.msra.mxu0 %v2417_v58 }
 0x2e1   : > { %2188 = vmatprep.subr.bf16.mxu0 %v2418_v45 }
 0x2e4   : > { %2189 = vmatpush3.bf16.msra.mxu0 %v2419_v59 }
 0x2e5   : > { %2190 = vmatprep.subr.bf16.mxu0 %v2420_v60 }
 0x2e8   : > { %2191 = vmatpush3.bf16.msra.mxu0 %v2421_v61 }
 0x397   : > { %v2142_v4 = vpop.f32.mrf.mxu0 }
 0x399   : > { %v2143_v6 = vpop.f32.mrf.mxu0 }
 0x39a   : > { %v2144_v8 = vadd.f32 %v2143_v6, %v2142_v4  ;;  %v1289_v4 = vsub.s32 5, %v2618_v12 }
 0x39b   : > { %v2145_v9 = vpop.f32.mrf.mxu0 }
 0x39c   : > { %v1200_v10 = vadd.f32 %v2144_v8, %v1068_v5  ;;  %v1290_v8 = vrot.slane %v2663_v7, %v1289_v4 }
 0x39d   : > { %v2146_v11 = vpop.f32.mrf.mxu0 }
 0x39e   : > { %v1214_v13 = vmax.f32 %v1200_v10, 0.0  ;;  %v2147_v14 = vadd.f32 %v2146_v11, %v2145_v9 }
 0x39f   : > { %v2148_v15 = vpop.f32.mrf.mxu0 }
 0x3a0   : > { %v1203_v16 = vadd.f32 %v2147_v14, %v1068_v5  ;;  %v1218_v18 = vadd.f32 %v1214_v13, %v2682_v29 }
 0x3a1   : > { %v2149_v17 = vpop.f32.mrf.mxu0 }
 0x3a2   : > { %v1215_v19 = vmax.f32 %v1203_v16, 0.0  ;;  %v2150_v20 = vadd.f32 %v2149_v17, %v2148_v15  ;;  %v1222_v26 = vmax.f32 %v1218_v18, 0.0 }
 0x3a3   : > { %v2151_v22 = vpop.f32.mrf.mxu0 }
 0x3a4   : > { %v1219_v23 = vadd.f32 %v1215_v19, %v2684_v31  ;;  %v1208_v28 = vadd.f32 %v2150_v20, %v1068_v5  ;;  %v1226_v31 = vrot.slane %v1222_v26, 4 }
 0x3a5   : > { %v2152_v25 = vpop.f32.mrf.mxu0 }
 0x3a6   : > { %v1223_v27 = vmax.f32 %v1219_v23, 0.0  ;;  %v2153_v30 = vadd.f32 %v2152_v25, %v2151_v22  ;;  %v1216_v34 = vmax.f32 %v1208_v28, 0.0 }
 0x3a8   : > { %v1211_v32 = vadd.f32 %v2153_v30, %v1068_v5  ;;  %v1253_v33 = vpack.c.bf16 %v1223_v27, %v1222_v26  ;;  %v1227_v38 = vrot.slane %v1223_v27, 4  ;;  %v1220_v29 = vadd.f32 %v1216_v34, %v2695_v47 }
 0x3aa   : > { %v1217_v35 = vmax.f32 %v1211_v32, 0.0  ;;  %1419 = vmatprep.mubr.bf16.mxu1 %v1253_v33  ;;  %v1233_v41 = vsel %vm1230_vm12, %v1226_v31, %v1227_v38  ;;  %v1224_v42 = vmax.f32 %v1220_v29, 0.0 }
 0x3ac   : > { %v1221_v36 = vadd.f32 %v1217_v35, %v2689_v43  ;;  %v1228_v21 = vrot.slane %v1224_v42, 4 }
 0x3ae   : > { %v1225_v39 = vmax.f32 %v1221_v36, 0.0  ;;  %v1232_v51 = vsel %vm1230_vm12, %v1227_v38, %v1228_v21 }
 0x3b0   : > { %v1229_v40 = vrot.slane %v1225_v39, 4  ;;  %v1254_v48 = vpack.c.bf16 %v1225_v39, %v1224_v42 }
 0x3b2   : > { %v1234_v44 = vsel %vm1230_vm12, %v1229_v40, %v1226_v31  ;;  %v1231_v50 = vsel %vm1230_vm12, %v1228_v21, %v1229_v40 }
 0x3b3   : > { %v1986_v47 = vpack.c.bf16 %v1233_v41, %v1234_v44  ;;  %v1989_v53 = vpack.c.bf16 %v1231_v50, %v1232_v51 }
 0x3b5   : > { %1987 = vmatmul.mubr.msk.bf16.vlgmr.msra.gmra.mxu1 %vm2750_vm14, %v1986_v47  ;;  %v1490_v47 = vsub.s32 6, %v2618_v12 }
 0x3b6   : > { %2241 = vmatpush3.bf16.msra.mxu1 %v2404_v62  ;;  %1427 = vmatprep.mubr.bf16.mxu1 %v1254_v48  ;;  %v2422_v62 = vld [vmem:[#allocation3 + $0x310] sm:$0xff]  }
 0x3b7   : > { %2242 = vmatprep.subr.bf16.mxu1 %v2405_v46  ;;  %2192 = vmatprep.subr.bf16.mxu0 %v2422_v62  ;;  %v1491_v21 = vrot.slane %v2663_v7, %v1490_v47 }
 0x3b8   : > { %2193 = vmatpush3.bf16.msra.mxu0 %v2423_v63 }
 0x3b9   : > { %2194 = vmatprep.subr.bf16.mxu0 %v2424_v0 }
 0x3ba   : > { %2243 = vmatpush3.bf16.msra.mxu1 %v2405_v46 }
 0x3bb   : > { %2244 = vmatprep.subr.bf16.mxu1 %v2406_v37 }
 0x3bc   : > { %2195 = vmatpush3.bf16.msra.mxu0 %v2425_v1 }
 0x3bd   : > { %1990 = vmatmul.mubr.msk.bf16.gmra.mxu1 %vm2762_vm0, %v1989_v53  ;;  %2196 = vmatprep.subr.bf16.mxu0 %v2426_v2 }
 0x3be   : > { %2245 = vmatpush3.bf16.msra.mxu1 %v2406_v37  ;;  %2256 = vmatprep.mubr.bf16.mxu1 %v1253_v33 }
 0x3bf   : > { %2246 = vmatprep.subr.bf16.mxu1 %v2407_v49 }
 0x3c0   : > { %2197 = vmatpush3.bf16.msra.mxu0 %v2427_v3 }
 0x3c2   : > { %2247 = vmatpush3.bf16.msra.mxu1 %v2407_v49 }
 0x3c3   : > { %2248 = vmatprep.subr.bf16.mxu1 %v2408_v24 }
 0x3c6   : > { %2249 = vmatpush3.bf16.msra.mxu1 %v2408_v24 }
 0x3c7   : > { %2250 = vmatprep.subr.bf16.mxu1 %v2409_v54 }
 0x3ca   : > { %2251 = vmatpush3.bf16.msra.mxu1 %v2409_v54 }
 0x3cb   : > { %2252 = vmatprep.subr.bf16.mxu1 %v2410_v55 }
 0x3ce   : > { %2253 = vmatpush3.bf16.msra.mxu1 %v2410_v55 }
 0x3cf   : > { %2254 = vmatprep.subr.bf16.mxu1 %v2411_v56 }
 0x3d2   : > { %2255 = vmatpush3.bf16.msra.mxu1 %v2411_v56 }
 0x3d5   : > { %2257 = vmatmul.mubr.bf16.vlgmr.msra.gmra.mxu1 %v1254_v48  ;;  %v1659_v48 = vsub.s32 7, %v2618_v12 }
 0x3d7   : > { %v1660_v49 = vrot.slane %v2663_v7, %v1659_v48 }
 0x475   : > { %v2170_v5 = vpop.f32.mrf.mxu1 }
 0x477   : > { %v2171_v6 = vpop.f32.mrf.mxu1 }
 0x478   : > { %v2172_v9 = vadd.f32 %v2171_v6, %v2170_v5 }
 0x479   : > { %v2173_v10 = vpop.f32.mrf.mxu1 }
 0x47a   : > { %v1422_v13 = vadd.f32 %v2172_v9, %v1290_v8 }
 0x47b   : > { %v2174_v11 = vpop.f32.mrf.mxu1 }
 0x47c   : > { %v2175_v14 = vadd.f32 %v2174_v11, %v2173_v10  ;;  %v1436_v18 = vmax.f32 %v1422_v13, 0.0 }
 0x47d   : > { %v2176_v15 = vpop.f32.mrf.mxu1 }
 0x47e   : > { %v1425_v16 = vadd.f32 %v2175_v14, %v1290_v8  ;;  %v1440_v33 = vrot.slane %v1436_v18, 4 }
 0x47f   : > { %v2177_v17 = vpop.f32.mrf.mxu1 }
 0x480   : > { %v1437_v19 = vmax.f32 %v1425_v16, 0.0  ;;  %v2178_v25 = vadd.f32 %v2177_v17, %v2176_v15 }
 0x481   : > { %v2179_v20 = vpop.f32.mrf.mxu1 }
 0x482   : > { %v1454_v22 = vpack.c.bf16 %v1437_v19, %v1436_v18  ;;  %v1441_v28 = vrot.slane %v1437_v19, 4  ;;  %v1430_v30 = vadd.f32 %v2178_v25, %v1290_v8 }
 0x483   : > { %v2180_v23 = vpop.f32.mrf.mxu1 }
 0x484   : > { %v2181_v26 = vadd.f32 %v2180_v23, %v2179_v20  ;;  %1620 = vmatprep.mubr.bf16.mxu0 %v1454_v22  ;;  %v1446_v35 = vsel %vm1230_vm12, %v1440_v33, %v1441_v28  ;;  %v1438_v36 = vmax.f32 %v1430_v30, 0.0 }
 0x486   : > { %v1433_v27 = vadd.f32 %v2181_v26, %v1290_v8  ;;  %v1442_v31 = vrot.slane %v1438_v36, 4 }
 0x488   : > { %v1439_v32 = vmax.f32 %v1433_v27, 0.0  ;;  %v1445_v41 = vsel %vm1230_vm12, %v1441_v28, %v1442_v31 }
 0x48a   : > { %v1443_v34 = vrot.slane %v1439_v32, 4  ;;  %v1455_v39 = vpack.c.bf16 %v1439_v32, %v1438_v36 }
 0x48c   : > { %v1447_v38 = vsel %vm1230_vm12, %v1443_v34, %v1440_v33  ;;  %v1444_v40 = vsel %vm1230_vm12, %v1442_v31, %v1443_v34 }
 0x48d   : > { %v2008_v29 = vpack.c.bf16 %v1446_v35, %v1447_v38  ;;  %v2011_v42 = vpack.c.bf16 %v1444_v40, %v1445_v41 }
 0x48f   : > { %2009 = vmatmul.mubr.msk.bf16.vlgmr.msra.gmra.mxu0 %vm2750_vm14, %v2008_v29 }
 0x490   : > { %1628 = vmatprep.mubr.bf16.mxu0 %v1455_v39 }
 0x495   : > { %v2258_v44 = vpop.f32.mrf.mxu1 }
 0x496   : > { %v1752_v3 = vadd.f32 %v2258_v44, %v1660_v49 }
 0x497   : > { %2012 = vmatmul.mubr.msk.bf16.gmra.mxu0 %vm2762_vm0, %v2011_v42  ;;  %v1743_v46 = vpop.f32.mrf.mxu1 }
 0x498   : > { %v1744_v54 = vadd.f32 %v1743_v46, %v1660_v49 }
 0x499   : > { %v2259_v51 = vpop.f32.mrf.mxu1 }
 0x49a   : > { %v1755_v10 = vadd.f32 %v2259_v51, %v1660_v49 }
 0x49b   : > { %v1746_v57 = vpop.f32.mrf.mxu1 }
 0x49c   : > { %v1747_v60 = vadd.f32 %v1746_v57, %v1660_v49 }
 0x54f   : > { %v2198_v43 = vpop.f32.mrf.mxu0 }
 0x551   : > { %v2199_v37 = vpop.f32.mrf.mxu0 }
 0x552   : > { %v2200_v50 = vadd.f32 %v2199_v37, %v2198_v43 }
 0x553   : > { %v2201_v53 = vpop.f32.mrf.mxu0 }
 0x554   : > { %v1623_v24 = vadd.f32 %v2200_v50, %v1491_v21 }
 0x555   : > { %v2202_v52 = vpop.f32.mrf.mxu0 }
 0x556   : > { %v1637_v55 = vmax.f32 %v1623_v24, 0.0  ;;  %v2203_v56 = vadd.f32 %v2202_v52, %v2201_v53 }
 0x557   : > { %v2204_v58 = vpop.f32.mrf.mxu0 }
 0x558   : > { %v1758_v45 = vadd.f32 %v1744_v54, %v1637_v55  ;;  %v1626_v12 = vadd.f32 %v2203_v56, %v1491_v21 }
 0x559   : > { %v2205_v59 = vpop.f32.mrf.mxu0 }
 0x55a   : > { %v1762_v61 = vmax.f32 %v1758_v45, 0.0  ;;  %v1638_v62 = vmax.f32 %v1626_v12, 0.0  ;;  %v2206_v63 = vadd.f32 %v2205_v59, %v2204_v58 }
 0x55b   : > { %v2207_v0 = vpop.f32.mrf.mxu0 }
 0x55c   : > { %1767 = vst.msk [vmem:[%s181_s20] sm:$0xff] %vm1766_vm1, %v1762_v61  ;;  %v1759_v7 = vadd.f32 %v1747_v60, %v1638_v62  ;;  %v1631_v1 = vadd.f32 %v2206_v63, %v1491_v21 }
 0x55d   : > { %v2208_v2 = vpop.f32.mrf.mxu0 }
 0x55e   : > { %v1763_v4 = vmax.f32 %v1759_v7, 0.0  ;;  %v1639_v5 = vmax.f32 %v1631_v1, 0.0  ;;  %v2209_v6 = vadd.f32 %v2208_v2, %v2207_v0 }
 0x560   : > { %1768 = vst.msk [vmem:[%s181_s20 + $0x8] sm:$0xff] %vm1766_vm1, %v1763_v4  ;;  %v1760_v8 = vadd.f32 %v1752_v3, %v1639_v5  ;;  %v1634_v9 = vadd.f32 %v2209_v6, %v1491_v21 }
 0x562   : > { %v1764_v11 = vmax.f32 %v1760_v8, 0.0  ;;  %v1640_v13 = vmax.f32 %v1634_v9, 0.0 }
 0x564   : > { %2021 = vst.msk [vmem:[%s181_s20 + $0x10] sm:$0xff] %vm1766_vm1, %v1764_v11  ;;  %v1761_v14 = vadd.f32 %v1755_v10, %v1640_v13 }
 0x566   : > { %v1765_v15 = vmax.f32 %v1761_v14, 0.0 }
 0x568   : > { %2022 = vst.msk [vmem:[%s181_s20 + $0x18] sm:$0xff] %vm1766_vm1, %v1765_v15 }
 0x569   : > { %2467 = shalt.err (!%p2464_p0)
}
 0x56a   : > { %s2468_s6 = scalar_lea.hbm %s2796_s28, 512  ;;  %s2472_s9 = scalar_lea.hbm %s2846_s3, 1024 }
 0x56b   : > { %p2469_p1 = scmp.ne.s32.totalorder %s2796_s28, %s2468_s6  ;;  %p2473_p4 = scmp.lt.s32.totalorder %s2796_s28, %s2846_s3 }
 0x56c   : > { %p2474_p7 = scmp.lt.s32.totalorder %s2472_s9, %s2468_s6 }
 0x56d   : > { %p2470_p2 = pnand %p2469_p1, %p2586_p5 }
 0x56e   : > { %p2475_p6 = por %p2474_p7, %p2473_p4 }
 0x56f   : > { %p2471_p3 = pneg %p2470_p2 }
 0x571   : > { %p2476_p8 = pnand %p2475_p6, %p2471_p3 }
 0x573   : > { %2479 = shalt.err (!%p2476_p8)
}
 0x574   : > { %s2526_s17 = smov 128   ;;  %s2527_s19 = smov 8  }
 0x575   : > { %2264 = dma.vmem_to_hbm [thread:$0]  (%p2586_p5), %s2798_s25, 512, %s2796_s28, %s2803_s29, %s2526_s17, %s2526_s17, %s2527_s19  }
 0x576 PF: > { %p2276_p9 = scmp.ge.s32.totalorder %s2518_s15, 2  ;;  %s1802_s20 = sand.u32 1, %s2506_s12  }
 0x577   : > { %p2862_p10 = scmp.ne.s32.totalorder %s2848_s23, 0  ;;  %s1803_s24 = scalar_lea.sflag [#allocation5], %s1802_s20 }
 0x579   : > { %p2271_p11 = pnand %p2276_p9, %p2862_p10 }
 0x57b   : > { %p2272_p12 = pneg %p2271_p11 }
 0x57d   : > { %2501 = dma.done.wait (%p2272_p12), %s1803_s24, 512  }
 0x57e   : > { %2503 = vsyncadd (%p2272_p12), %s1803_s24, 4294966784  ;;  %p14_p13 = scmp.ge.s32.totalorder %s2573_s18, 4   ;;  %s2863_s12 = smov %s2510_s13 }
 0x57f   : > { %s2864_s13 = smov %s2514_s14  ;;  %s2865_s14 = smov %s2584_s21 }
 0x580   : > { %s2866_s15 = smov %s2573_s18  ;;  %16 = sbr.rel (!%p14_p13) target bundleno = 4 (0x4), region = 74 }
 0x585   :  { %1808 = vsyncpa [#allocation4], 1 }
 0x586   :  { %1810 = vsyncpa [#allocation4 + $0x1], 1 }
 0x587   :  { %1811 = vsyncpa [#allocation5], 1 }
 0x588   :  { %1813 = vsyncpa [#allocation5 + $0x1], 1 }

</bundles_post_ra>
